<compile_context>
chip_gen: v7x
topology: tpu7x:2x2x1
jax: 0.10.0
libtpu: 0.0.40
codegen_flags: <defaults>
</compile_context>

<pallas_src>
import functools
import math

import jax
import jax.numpy as jnp
import numpy as np
from jax.experimental import pallas as pl
from jax.experimental.pallas import tpu as pltpu

NUM_HEADS = 4
NEG_INF = -1e30


# ----------------------------------------------------------------------------
# Pallas kernel: fused multi-head cross-attention + margin contrastive loss.
#   q_emb_ref : [N, E]    f32  vn embeddings (queries, shared across batch)
#   vf_ref    : [Bf*L, C] bf16 flattened visual features
#   mask_ref  : [Bf, L]   f32  additive key-padding mask (0 / -1e30)
#   pos_ref   : [N, Bf]   f32  one-hot: positive sample per vn
#   neg_ref   : [N, Bf]   f32  one-hot: negative sample per vn
#   weights   : wq [E,E], bq [1,E], wkv [C,2E] bf16, bkv [1,2E],
#               wo [E,E], bo [1,E]
# outputs:
#   out_ref   : [Bf, N, E] f32  cross-attention output
#   loss_ref  : [1, 1]     f32  (SMEM) margin contrastive loss
# ----------------------------------------------------------------------------
def _fused_attn_loss_kernel(q_emb_ref, vf_ref, mask_ref, pos_ref, neg_ref,
                            wq_ref, bq_ref, wkv_ref, bkv_ref, wo_ref, bo_ref,
                            out_ref, loss_ref, *, num_heads, batch, seq, margin):
    N, E = q_emb_ref.shape
    hd = E // num_heads
    scale = 1.0 / math.sqrt(hd)
    L = seq

    q_emb = q_emb_ref[...]
    # Shared query projection, computed exactly once (hoisted out of batch loop).
    q = (jnp.dot(q_emb, wq_ref[...], preferred_element_type=jnp.float32)
         + bq_ref[...]) * scale                                          # [N, E]

    # Fused, whole-batch K|V projection: one bf16 MXU matmul, 128-lane result.
    kv = jnp.dot(vf_ref[...], wkv_ref[...],
                 preferred_element_type=jnp.float32) + bkv_ref[...]      # [Bf*L, 2E]

    mask_all = mask_ref[...]                                             # [Bf, L]
    wo_all = wo_ref[...]                                                 # [E, E]
    bo_all = bo_ref[...]                                                 # [1, E]
    pos_w = pos_ref[...]                                                 # [N, Bf]
    neg_w = neg_ref[...]                                                 # [N, Bf]

    pos_acc = jnp.zeros((N, E), jnp.float32)
    neg_acc = jnp.zeros((N, E), jnp.float32)

    # Static (trace-time) loop over the filtered batch.  For large Bf on v7x
    # this could become a 2-step "parallel" grid to use both TensorCores; at
    # these tiny sizes a single step minimizes launch overhead.
    for b in range(batch):
        kv_b = kv[b * L:(b + 1) * L, :]                                  # [L, 2E]
        mask_b = mask_all[b:b + 1, :]                                    # [1, L]
        acc = jnp.zeros((N, E), jnp.float32)
        for h in range(num_heads):
            qh = q[:, h * hd:(h + 1) * hd]                               # [N, hd]
            kh = kv_b[:, h * hd:(h + 1) * hd]                            # [L, hd]
            vh = kv_b[:, E + h * hd:E + (h + 1) * hd]                    # [L, hd]
            # contract on the feature dim directly (no materialized k^T)
            s = jax.lax.dot_general(qh, kh, (((1,), (1,)), ((), ())),
                                    preferred_element_type=jnp.float32)  # [N, L]
            s = s + mask_b
            s = s - jnp.max(s, axis=-1, keepdims=True)
            p = jnp.exp(s)
            p = p * pl.reciprocal(jnp.sum(p, axis=-1, keepdims=True),
                                  approx=True)
            attn_h = jnp.dot(p, vh, preferred_element_type=jnp.float32)  # [N, hd]
            # fold head output through matching Wo rows instead of concatenating
            acc = acc + jnp.dot(attn_h, wo_all[h * hd:(h + 1) * hd, :],
                                preferred_element_type=jnp.float32)
        out_b = acc + bo_all                                             # [N, E]
        out_ref[b] = out_b.astype(out_ref.dtype)
        # in-kernel positive / negative sample selection (one-hot weighted sum)
        pos_acc = pos_acc + pos_w[:, b:b + 1] * out_b
        neg_acc = neg_acc + neg_w[:, b:b + 1] * out_b

    # cosine-similarity margin loss (matches F.normalize eps = 1e-12)
    def _normalize(x):
        ss = jnp.sum(x * x, axis=-1, keepdims=True)
        return x * jax.lax.rsqrt(jnp.maximum(ss, 1e-24))

    an = _normalize(q_emb)
    pos_score = jnp.sum(an * _normalize(pos_acc), axis=-1, keepdims=True)  # [N, 1]
    neg_score = jnp.sum(an * _normalize(neg_acc), axis=-1, keepdims=True)  # [N, 1]
    loss_ref[0, 0] = jnp.maximum(
        margin + jnp.mean(neg_score) - jnp.mean(pos_score), 0.0)


def pallas_attention_and_loss(q_emb, visual_feat, add_mask, pos_onehot,
                              neg_onehot, params, margin):
    Bf, L, C = visual_feat.shape
    N, E = q_emb.shape
    # host-side reshape is free; bf16 inputs for the only K=768 matmuls
    vf_flat = visual_feat.reshape(Bf * L, C).astype(jnp.bfloat16)
    wkv = params["wkv"].astype(jnp.bfloat16)

    kernel = functools.partial(_fused_attn_loss_kernel, num_heads=NUM_HEADS,
                               batch=Bf, seq=L, margin=float(margin))
    in_specs = [pl.BlockSpec(memory_space=pltpu.MemorySpace.VMEM)
                for _ in range(11)]
    xatten, loss = pl.pallas_call(
        kernel,
        out_shape=(jax.ShapeDtypeStruct((Bf, N, E), jnp.float32),
                   jax.ShapeDtypeStruct((1, 1), jnp.float32)),
        in_specs=in_specs,
        out_specs=(pl.BlockSpec(memory_space=pltpu.MemorySpace.VMEM),
                   pl.BlockSpec(memory_space=pltpu.MemorySpace.SMEM)),
    )(q_emb, vf_flat, add_mask, pos_onehot, neg_onehot,
      params["wq"], params["bq"], wkv, params["bkv"],
      params["wo"], params["bo"])
    return xatten, loss[0, 0]


# ----------------------------------------------------------------------------
# Host-side glue mirroring the PyTorch dynamic-shape bookkeeping.
# ----------------------------------------------------------------------------
def _random_from_mask(a, rng, num_per_row=1):
    rows, cols = np.nonzero(a != 0)
    if rows.size == 0:
        return np.zeros((0,), dtype=np.int64)
    ret = []
    for u in np.unique(rows):
        idx = np.nonzero(rows == u)[0]
        c = rng.integers(0, idx.size, size=num_per_row)[0]
        ret.append([rows[idx[c]], cols[idx[c]]])
    return np.asarray(ret, dtype=np.int64)


def inter_sample_contrastive_loss(params, visual_feat, visual_feat_len, vns,
                                  vn_len, margin, matched_thresh, sample_rng):
    visual_feat = np.asarray(visual_feat)
    visual_feat_len = np.asarray(visual_feat_len)
    vns = np.asarray(vns)
    vn_len = np.asarray(vn_len)

    # filter samples with enough matched vns
    f_idxs = np.nonzero(vn_len > matched_thresh)[0]
    visual_feat = visual_feat[f_idxs]
    visual_feat_len = visual_feat_len[f_idxs]
    vns = vns[f_idxs]
    vn_len = vn_len[f_idxs]

    max_vn = int(vn_len.max()) if vn_len.size > 0 else 20
    vns = vns[:, :max_vn]
    Bf, Lvn = vns.shape

    # vn padding mask (True == padded)
    vn_mask = vn_len[:, None].astype(np.int64) < np.arange(1, Lvn + 1)[None, :]
    masked_vns = np.where(vn_mask, -1, vns)

    # drop vns that appear in (at least) every sample
    uvals, counts = np.unique(masked_vns, return_counts=True)
    for vo in uvals[counts >= Bf]:
        if vo == -1:
            continue
        sel = masked_vns == vo
        masked_vns = np.where(sel, -1, masked_vns)
        vn_mask = vn_mask | sel

    batch_vns, inv = np.unique(masked_vns.ravel(), return_inverse=True)
    inv = inv.reshape(masked_vns.shape)
    if batch_vns.size > 0 and batch_vns[0] == -1:
        batch_vns = batch_vns[1:]
        inv = inv - 1

    bvn_ids = np.broadcast_to(np.arange(Bf)[:, None], (Bf, Lvn))
    pos_coord = np.stack([inv, bvn_ids], axis=2)[~vn_mask]

    Nv = batch_vns.shape[0]
    bvn_sample_mask = np.zeros((Nv, Bf), dtype=np.float32)
    bvn_sample_mask[pos_coord[:, 0], pos_coord[:, 1]] = 1.0

    # key padding mask for visual features -> additive mask for attention
    L = visual_feat.shape[1]
    key_padding_mask = (visual_feat_len[:, None].astype(np.int64)
                        < np.arange(1, L + 1)[None, :])
    add_mask = np.where(key_padding_mask, NEG_INF, 0.0).astype(np.float32)  # [Bf, L]

    # embedding lookup (gather glue)
    batch_vn_embed = np.asarray(params["embed"])[batch_vns].astype(np.float32)  # [Nv, E]

    # random positive / negative sample per vn (host, deterministic rng);
    # only depends on the vn/sample mask -> can be chosen before the kernel.
    pos_idx = _random_from_mask(bvn_sample_mask, sample_rng)
    neg_idx = _random_from_mask(1.0 - bvn_sample_mask, sample_rng)
    pos_onehot = np.zeros((Nv, Bf), np.float32)
    neg_onehot = np.zeros((Nv, Bf), np.float32)
    pos_onehot[pos_idx[:, 0], pos_idx[:, 1]] = 1.0
    neg_onehot[neg_idx[:, 0], neg_idx[:, 1]] = 1.0

    # ---- Pallas: fused cross attention + contrastive loss ----
    xatten_out, loss = pallas_attention_and_loss(
        jnp.asarray(batch_vn_embed),
        jnp.asarray(visual_feat, jnp.float32),
        jnp.asarray(add_mask),
        jnp.asarray(pos_onehot),
        jnp.asarray(neg_onehot),
        params, margin)                                    # [Bf, Nv, E], scalar
    return loss, np.asarray(xatten_out), batch_vn_embed, pos_idx, neg_idx


# ----------------------------------------------------------------------------
# Deterministic parameter init (shapes from the module's __init__).
# K and V projection weights / biases are pre-fused into wkv [C, 2E], bkv [1, 2E].
# ----------------------------------------------------------------------------
def init_params(key, vocab, embed_dim, kdim, vdim):
    ks = jax.random.split(key, 7)
    w = 0.05
    embed_w = jax.random.normal(ks[0], (vocab, embed_dim), jnp.float32)
    q_w = jax.random.normal(ks[1], (embed_dim, embed_dim), jnp.float32) * w
    k_w = jax.random.normal(ks[2], (embed_dim, kdim), jnp.float32) * w
    v_w = jax.random.normal(ks[3], (embed_dim, vdim), jnp.float32) * w
    in_b = jax.random.normal(ks[4], (3 * embed_dim,), jnp.float32) * w
    o_w = jax.random.normal(ks[5], (embed_dim, embed_dim), jnp.float32) * w
    o_b = jax.random.normal(ks[6], (embed_dim,), jnp.float32) * w
    return dict(
        embed=embed_w,
        wq=q_w.T, bq=in_b[:embed_dim].reshape(1, -1),
        wkv=jnp.concatenate([k_w.T, v_w.T], axis=1),        # [C, 2E]
        bkv=in_b[embed_dim:].reshape(1, -1),                 # [1, 2E] (bk | bv)
        wo=o_w.T, bo=o_b.reshape(1, -1),
    )


# ----------------------------------------------------------------------------
# Pure-JAX reference (for correctness checking only)
# ----------------------------------------------------------------------------
def _mha_reference(q_emb, visual_feat, add_mask, params):
    E = q_emb.shape[-1]
    hd = E // NUM_HEADS
    wk = params["wkv"][:, :E].astype(jnp.bfloat16)
    wv = params["wkv"][:, E:].astype(jnp.bfloat16)
    bk = params["bkv"][:, :E]
    bv = params["bkv"][:, E:]
    vf16 = visual_feat.astype(jnp.bfloat16)
    q = q_emb @ params["wq"] + params["bq"]                               # [N, E]
    k = jnp.einsum("blc,ce->ble", vf16, wk,
                   preferred_element_type=jnp.float32) + bk
    v = jnp.einsum("blc,ce->ble", vf16, wv,
                   preferred_element_type=jnp.float32) + bv
    outs = []
    for h in range(NUM_HEADS):
        qh = q[:, h * hd:(h + 1) * hd] / math.sqrt(hd)
        kh = k[:, :, h * hd:(h + 1) * hd]
        vh = v[:, :, h * hd:(h + 1) * hd]
        s = jnp.einsum("nd,bld->bnl", qh, kh) + add_mask                  # [B, N, L]
        p = jax.nn.softmax(s, axis=-1)
        outs.append(jnp.einsum("bnl,bld->bnd", p, vh))
    attn = jnp.concatenate(outs, axis=-1)
    return jnp.einsum("bne,ef->bnf", attn, params["wo"]) + params["bo"]


def _loss_reference(a, pos_x, neg_x, margin):
    def norm(x):
        return x / jnp.maximum(jnp.linalg.norm(x, axis=-1, keepdims=True), 1e-12)
    ps = jnp.sum(norm(a) * norm(pos_x), axis=-1)
    ns = jnp.sum(norm(a) * norm(neg_x), axis=-1)
    return jnp.maximum(margin + ns.mean() - ps.mean(), 0.0)


if __name__ == "__main__":
    B, L, C = 4, 16, 768          # C must be 768 (module hardcodes kdim=vdim=768)
    VOCAB, E = 64, 64             # vn embedding table [VOCAB, E], num_heads=4
    MARGIN = 0.5
    MATCHED_THRESH = 2

    key = jax.random.PRNGKey(0)
    k_vf, k_par = jax.random.split(key)
    visual_feat = jax.random.normal(k_vf, (B, L, C), dtype=jnp.float32)
    visual_feat_len = np.array([10, 16, 7, 12], dtype=np.int64)
    # deterministic vn ids / lengths (sample 1 gets filtered: vn_len <= thresh)
    vns = np.array([[3, 7, 12, 5, 9, 0, 0, 0],
                    [1, 0, 0, 0, 0, 0, 0, 0],
                    [3, 8, 12, 21, 15, 30, 0, 0],
                    [7, 8, 40, 2, 0, 0, 0, 0]], dtype=np.int64)
    vn_len = np.array([5, 1, 6, 4], dtype=np.int64)

    params = init_params(k_par, VOCAB, E, C, C)
    sample_rng = np.random.default_rng(0)

    loss, xatten_np, a_np, pos_idx, neg_idx = inter_sample_contrastive_loss(
        params, visual_feat, visual_feat_len, vns, vn_len,
        MARGIN, MATCHED_THRESH, sample_rng)
    loss = jax.block_until_ready(loss)

    # correctness check against a pure-JAX reference of the kernelized math
    f_idxs = np.nonzero(vn_len > MATCHED_THRESH)[0]
    vf_f = np.asarray(visual_feat)[f_idxs]
    vflen_f = visual_feat_len[f_idxs]
    kpm = vflen_f[:, None] < np.arange(1, L + 1)[None, :]
    add_mask_ref = np.where(kpm, NEG_INF, 0.0).astype(np.float32)[:, None, :]
    ref_x = _mha_reference(jnp.asarray(a_np), jnp.asarray(vf_f, jnp.float32),
                           jnp.asarray(add_mask_ref), params)             # [Bf, Nv, E]
    np.testing.assert_allclose(np.asarray(ref_x), xatten_np,
                               atol=5e-3, rtol=5e-3)
    ref_x_t = np.transpose(np.asarray(ref_x), (1, 0, 2))                  # [Nv, Bf, E]
    pos_x_ref = ref_x_t[pos_idx[:, 0], pos_idx[:, 1]]
    neg_x_ref = ref_x_t[neg_idx[:, 0], neg_idx[:, 1]]
    ref_loss = _loss_reference(jnp.asarray(a_np), jnp.asarray(pos_x_ref),
                               jnp.asarray(neg_x_ref), MARGIN)
    np.testing.assert_allclose(np.asarray(loss), np.asarray(ref_loss),
                               atol=5e-3, rtol=5e-3)

    print("KERNEL_OK")
</pallas_src>

<mosaic_0001>
module attributes {stable_mosaic.version = 11 : i64} {
  func.func @_fused_attn_loss_kernel(%arg0: memref<11x64xf32, #tpu.memory_space<vmem>>, %arg1: memref<48x768xbf16, #tpu.memory_space<vmem>>, %arg2: memref<3x16xf32, #tpu.memory_space<vmem>>, %arg3: memref<11x3xf32, #tpu.memory_space<vmem>>, %arg4: memref<11x3xf32, #tpu.memory_space<vmem>>, %arg5: memref<64x64xf32, #tpu.memory_space<vmem>>, %arg6: memref<1x64xf32, #tpu.memory_space<vmem>>, %arg7: memref<768x128xbf16, #tpu.memory_space<vmem>>, %arg8: memref<1x128xf32, #tpu.memory_space<vmem>>, %arg9: memref<64x64xf32, #tpu.memory_space<vmem>>, %arg10: memref<1x64xf32, #tpu.memory_space<vmem>>, %arg11: memref<3x11x64xf32, #tpu.memory_space<vmem>>, %arg12: memref<1x1xf32, #tpu.memory_space<smem>>) attributes {dimension_semantics = [], scalar_prefetch = 0 : i64, scratch_operands = 0 : i64, tpu.core_type = #tpu.core_type<tc>} {
    %c0 = arith.constant 0 : index
    %c0_0 = arith.constant 0 : index
    %0 = vector.load %arg0[%c0, %c0_0] : memref<11x64xf32, #tpu.memory_space<vmem>>, vector<11x64xf32>
    %c0_1 = arith.constant 0 : index
    %c0_2 = arith.constant 0 : index
    %1 = vector.load %arg5[%c0_1, %c0_2] : memref<64x64xf32, #tpu.memory_space<vmem>>, vector<64x64xf32>
    %cst = arith.constant dense<0.000000e+00> : vector<11x64xf32>
    %2 = tpu.matmul %0, %1, %cst {dimension_numbers = #tpu.dot_dimension_numbers<[1], [0], [0], [1], [0, 0, 1, 1], [], []>} : vector<11x64xf32>, vector<64x64xf32>, vector<11x64xf32> -> vector<11x64xf32>
    %c0_3 = arith.constant 0 : index
    %c0_4 = arith.constant 0 : index
    %3 = vector.load %arg6[%c0_3, %c0_4] : memref<1x64xf32, #tpu.memory_space<vmem>>, vector<1x64xf32>
    %4 = vector.broadcast %3 : vector<1x64xf32> to vector<11x64xf32>
    %5 = arith.addf %2, %4 : vector<11x64xf32>
    %cst_5 = arith.constant 2.500000e-01 : f32
    %6 = vector.broadcast %cst_5 : f32 to vector<11x64xf32>
    %7 = arith.mulf %5, %6 : vector<11x64xf32>
    %c0_6 = arith.constant 0 : index
    %c0_7 = arith.constant 0 : index
    %8 = vector.load %arg1[%c0_6, %c0_7] : memref<48x768xbf16, #tpu.memory_space<vmem>>, vector<48x768xbf16>
    %c0_8 = arith.constant 0 : index
    %c0_9 = arith.constant 0 : index
    %9 = vector.load %arg7[%c0_8, %c0_9] : memref<768x128xbf16, #tpu.memory_space<vmem>>, vector<768x128xbf16>
    %cst_10 = arith.constant dense<0.000000e+00> : vector<48x128xf32>
    %10 = tpu.matmul %8, %9, %cst_10 {dimension_numbers = #tpu.dot_dimension_numbers<[1], [0], [0], [1], [0, 0, 1, 1], [], []>} : vector<48x768xbf16>, vector<768x128xbf16>, vector<48x128xf32> -> vector<48x128xf32>
    %c0_11 = arith.constant 0 : index
    %c0_12 = arith.constant 0 : index
    %11 = vector.load %arg8[%c0_11, %c0_12] : memref<1x128xf32, #tpu.memory_space<vmem>>, vector<1x128xf32>
    %12 = vector.broadcast %11 : vector<1x128xf32> to vector<48x128xf32>
    %13 = arith.addf %10, %12 : vector<48x128xf32>
    %c0_13 = arith.constant 0 : index
    %c0_14 = arith.constant 0 : index
    %14 = vector.load %arg2[%c0_13, %c0_14] : memref<3x16xf32, #tpu.memory_space<vmem>>, vector<3x16xf32>
    %c0_15 = arith.constant 0 : index
    %c0_16 = arith.constant 0 : index
    %15 = vector.load %arg9[%c0_15, %c0_16] : memref<64x64xf32, #tpu.memory_space<vmem>>, vector<64x64xf32>
    %c0_17 = arith.constant 0 : index
    %c0_18 = arith.constant 0 : index
    %16 = vector.load %arg10[%c0_17, %c0_18] : memref<1x64xf32, #tpu.memory_space<vmem>>, vector<1x64xf32>
    %c0_19 = arith.constant 0 : index
    %c0_20 = arith.constant 0 : index
    %17 = vector.load %arg3[%c0_19, %c0_20] : memref<11x3xf32, #tpu.memory_space<vmem>>, vector<11x3xf32>
    %c0_21 = arith.constant 0 : index
    %c0_22 = arith.constant 0 : index
    %18 = vector.load %arg4[%c0_21, %c0_22] : memref<11x3xf32, #tpu.memory_space<vmem>>, vector<11x3xf32>
    %cst_23 = arith.constant 0.000000e+00 : f32
    %19 = vector.broadcast %cst_23 : f32 to vector<11x64xf32>
    %cst_24 = arith.constant 0.000000e+00 : f32
    %20 = vector.broadcast %cst_24 : f32 to vector<11x64xf32>
    %21 = vector.extract_strided_slice %13 {offsets = [0, 0], sizes = [16, 128], strides = [1, 1]} : vector<48x128xf32> to vector<16x128xf32>
    %22 = vector.extract_strided_slice %14 {offsets = [0, 0], sizes = [1, 16], strides = [1, 1]} : vector<3x16xf32> to vector<1x16xf32>
    %cst_25 = arith.constant 0.000000e+00 : f32
    %23 = vector.broadcast %cst_25 : f32 to vector<11x64xf32>
    %24 = vector.extract_strided_slice %7 {offsets = [0, 0], sizes = [11, 16], strides = [1, 1]} : vector<11x64xf32> to vector<11x16xf32>
    %25 = vector.extract_strided_slice %21 {offsets = [0, 0], sizes = [16, 16], strides = [1, 1]} : vector<16x128xf32> to vector<16x16xf32>
    %26 = vector.extract_strided_slice %21 {offsets = [0, 64], sizes = [16, 16], strides = [1, 1]} : vector<16x128xf32> to vector<16x16xf32>
    %cst_26 = arith.constant dense<0.000000e+00> : vector<11x16xf32>
    %27 = tpu.matmul %24, %25, %cst_26 {dimension_numbers = #tpu.dot_dimension_numbers<[1], [1], [0], [0], [0, 0, 1, 0], [], []>} : vector<11x16xf32>, vector<16x16xf32>, vector<11x16xf32> -> vector<11x16xf32>
    %28 = vector.broadcast %22 : vector<1x16xf32> to vector<11x16xf32>
    %29 = arith.addf %27, %28 : vector<11x16xf32>
    %cst_27 = arith.constant dense<0xFF800000> : vector<11xf32>
    %30 = vector.multi_reduction <maximumf>, %29, %cst_27 [1] : vector<11x16xf32> to vector<11xf32>
    %31 = vector.shape_cast %30 : vector<11xf32> to vector<11x1xf32>
    %32 = vector.broadcast %31 : vector<11x1xf32> to vector<11x16xf32>
    %33 = arith.subf %29, %32 : vector<11x16xf32>
    %34 = math.exp %33 : vector<11x16xf32>
    %cst_28 = arith.constant dense<0.000000e+00> : vector<11xf32>
    %35 = vector.multi_reduction <add>, %34, %cst_28 [1] : vector<11x16xf32> to vector<11xf32>
    %36 = vector.shape_cast %35 : vector<11xf32> to vector<11x1xf32>
    %37 = tpu.reciprocal %36 {approx = true} : vector<11x1xf32> -> vector<11x1xf32>
    %38 = vector.broadcast %37 : vector<11x1xf32> to vector<11x16xf32>
    %39 = arith.mulf %34, %38 : vector<11x16xf32>
    %cst_29 = arith.constant dense<0.000000e+00> : vector<11x16xf32>
    %40 = tpu.matmul %39, %26, %cst_29 {dimension_numbers = #tpu.dot_dimension_numbers<[1], [0], [0], [1], [0, 0, 1, 1], [], []>} : vector<11x16xf32>, vector<16x16xf32>, vector<11x16xf32> -> vector<11x16xf32>
    %41 = vector.extract_strided_slice %15 {offsets = [0, 0], sizes = [16, 64], strides = [1, 1]} : vector<64x64xf32> to vector<16x64xf32>
    %cst_30 = arith.constant dense<0.000000e+00> : vector<11x64xf32>
    %42 = tpu.matmul %40, %41, %cst_30 {dimension_numbers = #tpu.dot_dimension_numbers<[1], [0], [0], [1], [0, 0, 1, 1], [], []>} : vector<11x16xf32>, vector<16x64xf32>, vector<11x64xf32> -> vector<11x64xf32>
    %43 = arith.addf %23, %42 : vector<11x64xf32>
    %44 = vector.extract_strided_slice %7 {offsets = [0, 16], sizes = [11, 16], strides = [1, 1]} : vector<11x64xf32> to vector<11x16xf32>
    %45 = vector.extract_strided_slice %21 {offsets = [0, 16], sizes = [16, 16], strides = [1, 1]} : vector<16x128xf32> to vector<16x16xf32>
    %46 = vector.extract_strided_slice %21 {offsets = [0, 80], sizes = [16, 16], strides = [1, 1]} : vector<16x128xf32> to vector<16x16xf32>
    %cst_31 = arith.constant dense<0.000000e+00> : vector<11x16xf32>
    %47 = tpu.matmul %44, %45, %cst_31 {dimension_numbers = #tpu.dot_dimension_numbers<[1], [1], [0], [0], [0, 0, 1, 0], [], []>} : vector<11x16xf32>, vector<16x16xf32>, vector<11x16xf32> -> vector<11x16xf32>
    %48 = vector.broadcast %22 : vector<1x16xf32> to vector<11x16xf32>
    %49 = arith.addf %47, %48 : vector<11x16xf32>
    %cst_32 = arith.constant dense<0xFF800000> : vector<11xf32>
    %50 = vector.multi_reduction <maximumf>, %49, %cst_32 [1] : vector<11x16xf32> to vector<11xf32>
    %51 = vector.shape_cast %50 : vector<11xf32> to vector<11x1xf32>
    %52 = vector.broadcast %51 : vector<11x1xf32> to vector<11x16xf32>
    %53 = arith.subf %49, %52 : vector<11x16xf32>
    %54 = math.exp %53 : vector<11x16xf32>
    %cst_33 = arith.constant dense<0.000000e+00> : vector<11xf32>
    %55 = vector.multi_reduction <add>, %54, %cst_33 [1] : vector<11x16xf32> to vector<11xf32>
    %56 = vector.shape_cast %55 : vector<11xf32> to vector<11x1xf32>
    %57 = tpu.reciprocal %56 {approx = true} : vector<11x1xf32> -> vector<11x1xf32>
    %58 = vector.broadcast %57 : vector<11x1xf32> to vector<11x16xf32>
    %59 = arith.mulf %54, %58 : vector<11x16xf32>
    %cst_34 = arith.constant dense<0.000000e+00> : vector<11x16xf32>
    %60 = tpu.matmul %59, %46, %cst_34 {dimension_numbers = #tpu.dot_dimension_numbers<[1], [0], [0], [1], [0, 0, 1, 1], [], []>} : vector<11x16xf32>, vector<16x16xf32>, vector<11x16xf32> -> vector<11x16xf32>
    %61 = vector.extract_strided_slice %15 {offsets = [16, 0], sizes = [16, 64], strides = [1, 1]} : vector<64x64xf32> to vector<16x64xf32>
    %cst_35 = arith.constant dense<0.000000e+00> : vector<11x64xf32>
    %62 = tpu.matmul %60, %61, %cst_35 {dimension_numbers = #tpu.dot_dimension_numbers<[1], [0], [0], [1], [0, 0, 1, 1], [], []>} : vector<11x16xf32>, vector<16x64xf32>, vector<11x64xf32> -> vector<11x64xf32>
    %63 = arith.addf %43, %62 : vector<11x64xf32>
    %64 = vector.extract_strided_slice %7 {offsets = [0, 32], sizes = [11, 16], strides = [1, 1]} : vector<11x64xf32> to vector<11x16xf32>
    %65 = vector.extract_strided_slice %21 {offsets = [0, 32], sizes = [16, 16], strides = [1, 1]} : vector<16x128xf32> to vector<16x16xf32>
    %66 = vector.extract_strided_slice %21 {offsets = [0, 96], sizes = [16, 16], strides = [1, 1]} : vector<16x128xf32> to vector<16x16xf32>
    %cst_36 = arith.constant dense<0.000000e+00> : vector<11x16xf32>
    %67 = tpu.matmul %64, %65, %cst_36 {dimension_numbers = #tpu.dot_dimension_numbers<[1], [1], [0], [0], [0, 0, 1, 0], [], []>} : vector<11x16xf32>, vector<16x16xf32>, vector<11x16xf32> -> vector<11x16xf32>
    %68 = vector.broadcast %22 : vector<1x16xf32> to vector<11x16xf32>
    %69 = arith.addf %67, %68 : vector<11x16xf32>
    %cst_37 = arith.constant dense<0xFF800000> : vector<11xf32>
    %70 = vector.multi_reduction <maximumf>, %69, %cst_37 [1] : vector<11x16xf32> to vector<11xf32>
    %71 = vector.shape_cast %70 : vector<11xf32> to vector<11x1xf32>
    %72 = vector.broadcast %71 : vector<11x1xf32> to vector<11x16xf32>
    %73 = arith.subf %69, %72 : vector<11x16xf32>
    %74 = math.exp %73 : vector<11x16xf32>
    %cst_38 = arith.constant dense<0.000000e+00> : vector<11xf32>
    %75 = vector.multi_reduction <add>, %74, %cst_38 [1] : vector<11x16xf32> to vector<11xf32>
    %76 = vector.shape_cast %75 : vector<11xf32> to vector<11x1xf32>
    %77 = tpu.reciprocal %76 {approx = true} : vector<11x1xf32> -> vector<11x1xf32>
    %78 = vector.broadcast %77 : vector<11x1xf32> to vector<11x16xf32>
    %79 = arith.mulf %74, %78 : vector<11x16xf32>
    %cst_39 = arith.constant dense<0.000000e+00> : vector<11x16xf32>
    %80 = tpu.matmul %79, %66, %cst_39 {dimension_numbers = #tpu.dot_dimension_numbers<[1], [0], [0], [1], [0, 0, 1, 1], [], []>} : vector<11x16xf32>, vector<16x16xf32>, vector<11x16xf32> -> vector<11x16xf32>
    %81 = vector.extract_strided_slice %15 {offsets = [32, 0], sizes = [16, 64], strides = [1, 1]} : vector<64x64xf32> to vector<16x64xf32>
    %cst_40 = arith.constant dense<0.000000e+00> : vector<11x64xf32>
    %82 = tpu.matmul %80, %81, %cst_40 {dimension_numbers = #tpu.dot_dimension_numbers<[1], [0], [0], [1], [0, 0, 1, 1], [], []>} : vector<11x16xf32>, vector<16x64xf32>, vector<11x64xf32> -> vector<11x64xf32>
    %83 = arith.addf %63, %82 : vector<11x64xf32>
    %84 = vector.extract_strided_slice %7 {offsets = [0, 48], sizes = [11, 16], strides = [1, 1]} : vector<11x64xf32> to vector<11x16xf32>
    %85 = vector.extract_strided_slice %21 {offsets = [0, 48], sizes = [16, 16], strides = [1, 1]} : vector<16x128xf32> to vector<16x16xf32>
    %86 = vector.extract_strided_slice %21 {offsets = [0, 112], sizes = [16, 16], strides = [1, 1]} : vector<16x128xf32> to vector<16x16xf32>
    %cst_41 = arith.constant dense<0.000000e+00> : vector<11x16xf32>
    %87 = tpu.matmul %84, %85, %cst_41 {dimension_numbers = #tpu.dot_dimension_numbers<[1], [1], [0], [0], [0, 0, 1, 0], [], []>} : vector<11x16xf32>, vector<16x16xf32>, vector<11x16xf32> -> vector<11x16xf32>
    %88 = vector.broadcast %22 : vector<1x16xf32> to vector<11x16xf32>
    %89 = arith.addf %87, %88 : vector<11x16xf32>
    %cst_42 = arith.constant dense<0xFF800000> : vector<11xf32>
    %90 = vector.multi_reduction <maximumf>, %89, %cst_42 [1] : vector<11x16xf32> to vector<11xf32>
    %91 = vector.shape_cast %90 : vector<11xf32> to vector<11x1xf32>
    %92 = vector.broadcast %91 : vector<11x1xf32> to vector<11x16xf32>
    %93 = arith.subf %89, %92 : vector<11x16xf32>
    %94 = math.exp %93 : vector<11x16xf32>
    %cst_43 = arith.constant dense<0.000000e+00> : vector<11xf32>
    %95 = vector.multi_reduction <add>, %94, %cst_43 [1] : vector<11x16xf32> to vector<11xf32>
    %96 = vector.shape_cast %95 : vector<11xf32> to vector<11x1xf32>
    %97 = tpu.reciprocal %96 {approx = true} : vector<11x1xf32> -> vector<11x1xf32>
    %98 = vector.broadcast %97 : vector<11x1xf32> to vector<11x16xf32>
    %99 = arith.mulf %94, %98 : vector<11x16xf32>
    %cst_44 = arith.constant dense<0.000000e+00> : vector<11x16xf32>
    %100 = tpu.matmul %99, %86, %cst_44 {dimension_numbers = #tpu.dot_dimension_numbers<[1], [0], [0], [1], [0, 0, 1, 1], [], []>} : vector<11x16xf32>, vector<16x16xf32>, vector<11x16xf32> -> vector<11x16xf32>
    %101 = vector.extract_strided_slice %15 {offsets = [48, 0], sizes = [16, 64], strides = [1, 1]} : vector<64x64xf32> to vector<16x64xf32>
    %cst_45 = arith.constant dense<0.000000e+00> : vector<11x64xf32>
    %102 = tpu.matmul %100, %101, %cst_45 {dimension_numbers = #tpu.dot_dimension_numbers<[1], [0], [0], [1], [0, 0, 1, 1], [], []>} : vector<11x16xf32>, vector<16x64xf32>, vector<11x64xf32> -> vector<11x64xf32>
    %103 = arith.addf %83, %102 : vector<11x64xf32>
    %104 = vector.broadcast %16 : vector<1x64xf32> to vector<11x64xf32>
    %105 = arith.addf %103, %104 : vector<11x64xf32>
    %c0_46 = arith.constant 0 : index
    %c0_47 = arith.constant 0 : index
    %c0_48 = arith.constant 0 : index
    %106 = vector.load %arg11[%c0_46, %c0_47, %c0_48] : memref<3x11x64xf32, #tpu.memory_space<vmem>>, vector<1x11x64xf32>
    %107 = vector.shape_cast %106 : vector<1x11x64xf32> to vector<11x64xf32>
    %108 = vector.shape_cast %105 : vector<11x64xf32> to vector<1x11x64xf32>
    tpu.vector_store %arg11[%c0_46, %c0_47, %c0_48], %108 {strides = array<i32>} : memref<3x11x64xf32, #tpu.memory_space<vmem>>, vector<1x11x64xf32>,
    %109 = vector.extract_strided_slice %17 {offsets = [0, 0], sizes = [11, 1], strides = [1, 1]} : vector<11x3xf32> to vector<11x1xf32>
    %110 = vector.broadcast %109 : vector<11x1xf32> to vector<11x64xf32>
    %111 = arith.mulf %110, %105 : vector<11x64xf32>
    %112 = arith.addf %19, %111 : vector<11x64xf32>
    %113 = vector.extract_strided_slice %18 {offsets = [0, 0], sizes = [11, 1], strides = [1, 1]} : vector<11x3xf32> to vector<11x1xf32>
    %114 = vector.broadcast %113 : vector<11x1xf32> to vector<11x64xf32>
    %115 = arith.mulf %114, %105 : vector<11x64xf32>
    %116 = arith.addf %20, %115 : vector<11x64xf32>
    %117 = vector.extract_strided_slice %13 {offsets = [16, 0], sizes = [16, 128], strides = [1, 1]} : vector<48x128xf32> to vector<16x128xf32>
    %118 = vector.extract_strided_slice %14 {offsets = [1, 0], sizes = [1, 16], strides = [1, 1]} : vector<3x16xf32> to vector<1x16xf32>
    %cst_49 = arith.constant 0.000000e+00 : f32
    %119 = vector.broadcast %cst_49 : f32 to vector<11x64xf32>
    %120 = vector.extract_strided_slice %7 {offsets = [0, 0], sizes = [11, 16], strides = [1, 1]} : vector<11x64xf32> to vector<11x16xf32>
    %121 = vector.extract_strided_slice %117 {offsets = [0, 0], sizes = [16, 16], strides = [1, 1]} : vector<16x128xf32> to vector<16x16xf32>
    %122 = vector.extract_strided_slice %117 {offsets = [0, 64], sizes = [16, 16], strides = [1, 1]} : vector<16x128xf32> to vector<16x16xf32>
    %cst_50 = arith.constant dense<0.000000e+00> : vector<11x16xf32>
    %123 = tpu.matmul %120, %121, %cst_50 {dimension_numbers = #tpu.dot_dimension_numbers<[1], [1], [0], [0], [0, 0, 1, 0], [], []>} : vector<11x16xf32>, vector<16x16xf32>, vector<11x16xf32> -> vector<11x16xf32>
    %124 = vector.broadcast %118 : vector<1x16xf32> to vector<11x16xf32>
    %125 = arith.addf %123, %124 : vector<11x16xf32>
    %cst_51 = arith.constant dense<0xFF800000> : vector<11xf32>
    %126 = vector.multi_reduction <maximumf>, %125, %cst_51 [1] : vector<11x16xf32> to vector<11xf32>
    %127 = vector.shape_cast %126 : vector<11xf32> to vector<11x1xf32>
    %128 = vector.broadcast %127 : vector<11x1xf32> to vector<11x16xf32>
    %129 = arith.subf %125, %128 : vector<11x16xf32>
    %130 = math.exp %129 : vector<11x16xf32>
    %cst_52 = arith.constant dense<0.000000e+00> : vector<11xf32>
    %131 = vector.multi_reduction <add>, %130, %cst_52 [1] : vector<11x16xf32> to vector<11xf32>
    %132 = vector.shape_cast %131 : vector<11xf32> to vector<11x1xf32>
    %133 = tpu.reciprocal %132 {approx = true} : vector<11x1xf32> -> vector<11x1xf32>
    %134 = vector.broadcast %133 : vector<11x1xf32> to vector<11x16xf32>
    %135 = arith.mulf %130, %134 : vector<11x16xf32>
    %cst_53 = arith.constant dense<0.000000e+00> : vector<11x16xf32>
    %136 = tpu.matmul %135, %122, %cst_53 {dimension_numbers = #tpu.dot_dimension_numbers<[1], [0], [0], [1], [0, 0, 1, 1], [], []>} : vector<11x16xf32>, vector<16x16xf32>, vector<11x16xf32> -> vector<11x16xf32>
    %137 = vector.extract_strided_slice %15 {offsets = [0, 0], sizes = [16, 64], strides = [1, 1]} : vector<64x64xf32> to vector<16x64xf32>
    %cst_54 = arith.constant dense<0.000000e+00> : vector<11x64xf32>
    %138 = tpu.matmul %136, %137, %cst_54 {dimension_numbers = #tpu.dot_dimension_numbers<[1], [0], [0], [1], [0, 0, 1, 1], [], []>} : vector<11x16xf32>, vector<16x64xf32>, vector<11x64xf32> -> vector<11x64xf32>
    %139 = arith.addf %119, %138 : vector<11x64xf32>
    %140 = vector.extract_strided_slice %7 {offsets = [0, 16], sizes = [11, 16], strides = [1, 1]} : vector<11x64xf32> to vector<11x16xf32>
    %141 = vector.extract_strided_slice %117 {offsets = [0, 16], sizes = [16, 16], strides = [1, 1]} : vector<16x128xf32> to vector<16x16xf32>
    %142 = vector.extract_strided_slice %117 {offsets = [0, 80], sizes = [16, 16], strides = [1, 1]} : vector<16x128xf32> to vector<16x16xf32>
    %cst_55 = arith.constant dense<0.000000e+00> : vector<11x16xf32>
    %143 = tpu.matmul %140, %141, %cst_55 {dimension_numbers = #tpu.dot_dimension_numbers<[1], [1], [0], [0], [0, 0, 1, 0], [], []>} : vector<11x16xf32>, vector<16x16xf32>, vector<11x16xf32> -> vector<11x16xf32>
    %144 = vector.broadcast %118 : vector<1x16xf32> to vector<11x16xf32>
    %145 = arith.addf %143, %144 : vector<11x16xf32>
    %cst_56 = arith.constant dense<0xFF800000> : vector<11xf32>
    %146 = vector.multi_reduction <maximumf>, %145, %cst_56 [1] : vector<11x16xf32> to vector<11xf32>
    %147 = vector.shape_cast %146 : vector<11xf32> to vector<11x1xf32>
    %148 = vector.broadcast %147 : vector<11x1xf32> to vector<11x16xf32>
    %149 = arith.subf %145, %148 : vector<11x16xf32>
    %150 = math.exp %149 : vector<11x16xf32>
    %cst_57 = arith.constant dense<0.000000e+00> : vector<11xf32>
    %151 = vector.multi_reduction <add>, %150, %cst_57 [1] : vector<11x16xf32> to vector<11xf32>
    %152 = vector.shape_cast %151 : vector<11xf32> to vector<11x1xf32>
    %153 = tpu.reciprocal %152 {approx = true} : vector<11x1xf32> -> vector<11x1xf32>
    %154 = vector.broadcast %153 : vector<11x1xf32> to vector<11x16xf32>
    %155 = arith.mulf %150, %154 : vector<11x16xf32>
    %cst_58 = arith.constant dense<0.000000e+00> : vector<11x16xf32>
    %156 = tpu.matmul %155, %142, %cst_58 {dimension_numbers = #tpu.dot_dimension_numbers<[1], [0], [0], [1], [0, 0, 1, 1], [], []>} : vector<11x16xf32>, vector<16x16xf32>, vector<11x16xf32> -> vector<11x16xf32>
    %157 = vector.extract_strided_slice %15 {offsets = [16, 0], sizes = [16, 64], strides = [1, 1]} : vector<64x64xf32> to vector<16x64xf32>
    %cst_59 = arith.constant dense<0.000000e+00> : vector<11x64xf32>
    %158 = tpu.matmul %156, %157, %cst_59 {dimension_numbers = #tpu.dot_dimension_numbers<[1], [0], [0], [1], [0, 0, 1, 1], [], []>} : vector<11x16xf32>, vector<16x64xf32>, vector<11x64xf32> -> vector<11x64xf32>
    %159 = arith.addf %139, %158 : vector<11x64xf32>
    %160 = vector.extract_strided_slice %7 {offsets = [0, 32], sizes = [11, 16], strides = [1, 1]} : vector<11x64xf32> to vector<11x16xf32>
    %161 = vector.extract_strided_slice %117 {offsets = [0, 32], sizes = [16, 16], strides = [1, 1]} : vector<16x128xf32> to vector<16x16xf32>
    %162 = vector.extract_strided_slice %117 {offsets = [0, 96], sizes = [16, 16], strides = [1, 1]} : vector<16x128xf32> to vector<16x16xf32>
    %cst_60 = arith.constant dense<0.000000e+00> : vector<11x16xf32>
    %163 = tpu.matmul %160, %161, %cst_60 {dimension_numbers = #tpu.dot_dimension_numbers<[1], [1], [0], [0], [0, 0, 1, 0], [], []>} : vector<11x16xf32>, vector<16x16xf32>, vector<11x16xf32> -> vector<11x16xf32>
    %164 = vector.broadcast %118 : vector<1x16xf32> to vector<11x16xf32>
    %165 = arith.addf %163, %164 : vector<11x16xf32>
    %cst_61 = arith.constant dense<0xFF800000> : vector<11xf32>
    %166 = vector.multi_reduction <maximumf>, %165, %cst_61 [1] : vector<11x16xf32> to vector<11xf32>
    %167 = vector.shape_cast %166 : vector<11xf32> to vector<11x1xf32>
    %168 = vector.broadcast %167 : vector<11x1xf32> to vector<11x16xf32>
    %169 = arith.subf %165, %168 : vector<11x16xf32>
    %170 = math.exp %169 : vector<11x16xf32>
    %cst_62 = arith.constant dense<0.000000e+00> : vector<11xf32>
    %171 = vector.multi_reduction <add>, %170, %cst_62 [1] : vector<11x16xf32> to vector<11xf32>
    %172 = vector.shape_cast %171 : vector<11xf32> to vector<11x1xf32>
    %173 = tpu.reciprocal %172 {approx = true} : vector<11x1xf32> -> vector<11x1xf32>
    %174 = vector.broadcast %173 : vector<11x1xf32> to vector<11x16xf32>
    %175 = arith.mulf %170, %174 : vector<11x16xf32>
    %cst_63 = arith.constant dense<0.000000e+00> : vector<11x16xf32>
    %176 = tpu.matmul %175, %162, %cst_63 {dimension_numbers = #tpu.dot_dimension_numbers<[1], [0], [0], [1], [0, 0, 1, 1], [], []>} : vector<11x16xf32>, vector<16x16xf32>, vector<11x16xf32> -> vector<11x16xf32>
    %177 = vector.extract_strided_slice %15 {offsets = [32, 0], sizes = [16, 64], strides = [1, 1]} : vector<64x64xf32> to vector<16x64xf32>
    %cst_64 = arith.constant dense<0.000000e+00> : vector<11x64xf32>
    %178 = tpu.matmul %176, %177, %cst_64 {dimension_numbers = #tpu.dot_dimension_numbers<[1], [0], [0], [1], [0, 0, 1, 1], [], []>} : vector<11x16xf32>, vector<16x64xf32>, vector<11x64xf32> -> vector<11x64xf32>
    %179 = arith.addf %159, %178 : vector<11x64xf32>
    %180 = vector.extract_strided_slice %7 {offsets = [0, 48], sizes = [11, 16], strides = [1, 1]} : vector<11x64xf32> to vector<11x16xf32>
    %181 = vector.extract_strided_slice %117 {offsets = [0, 48], sizes = [16, 16], strides = [1, 1]} : vector<16x128xf32> to vector<16x16xf32>
    %182 = vector.extract_strided_slice %117 {offsets = [0, 112], sizes = [16, 16], strides = [1, 1]} : vector<16x128xf32> to vector<16x16xf32>
    %cst_65 = arith.constant dense<0.000000e+00> : vector<11x16xf32>
    %183 = tpu.matmul %180, %181, %cst_65 {dimension_numbers = #tpu.dot_dimension_numbers<[1], [1], [0], [0], [0, 0, 1, 0], [], []>} : vector<11x16xf32>, vector<16x16xf32>, vector<11x16xf32> -> vector<11x16xf32>
    %184 = vector.broadcast %118 : vector<1x16xf32> to vector<11x16xf32>
    %185 = arith.addf %183, %184 : vector<11x16xf32>
    %cst_66 = arith.constant dense<0xFF800000> : vector<11xf32>
    %186 = vector.multi_reduction <maximumf>, %185, %cst_66 [1] : vector<11x16xf32> to vector<11xf32>
    %187 = vector.shape_cast %186 : vector<11xf32> to vector<11x1xf32>
    %188 = vector.broadcast %187 : vector<11x1xf32> to vector<11x16xf32>
    %189 = arith.subf %185, %188 : vector<11x16xf32>
    %190 = math.exp %189 : vector<11x16xf32>
    %cst_67 = arith.constant dense<0.000000e+00> : vector<11xf32>
    %191 = vector.multi_reduction <add>, %190, %cst_67 [1] : vector<11x16xf32> to vector<11xf32>
    %192 = vector.shape_cast %191 : vector<11xf32> to vector<11x1xf32>
    %193 = tpu.reciprocal %192 {approx = true} : vector<11x1xf32> -> vector<11x1xf32>
    %194 = vector.broadcast %193 : vector<11x1xf32> to vector<11x16xf32>
    %195 = arith.mulf %190, %194 : vector<11x16xf32>
    %cst_68 = arith.constant dense<0.000000e+00> : vector<11x16xf32>
    %196 = tpu.matmul %195, %182, %cst_68 {dimension_numbers = #tpu.dot_dimension_numbers<[1], [0], [0], [1], [0, 0, 1, 1], [], []>} : vector<11x16xf32>, vector<16x16xf32>, vector<11x16xf32> -> vector<11x16xf32>
    %197 = vector.extract_strided_slice %15 {offsets = [48, 0], sizes = [16, 64], strides = [1, 1]} : vector<64x64xf32> to vector<16x64xf32>
    %cst_69 = arith.constant dense<0.000000e+00> : vector<11x64xf32>
    %198 = tpu.matmul %196, %197, %cst_69 {dimension_numbers = #tpu.dot_dimension_numbers<[1], [0], [0], [1], [0, 0, 1, 1], [], []>} : vector<11x16xf32>, vector<16x64xf32>, vector<11x64xf32> -> vector<11x64xf32>
    %199 = arith.addf %179, %198 : vector<11x64xf32>
    %200 = vector.broadcast %16 : vector<1x64xf32> to vector<11x64xf32>
    %201 = arith.addf %199, %200 : vector<11x64xf32>
    %c1 = arith.constant 1 : index
    %c0_70 = arith.constant 0 : index
    %c0_71 = arith.constant 0 : index
    %202 = vector.load %arg11[%c1, %c0_70, %c0_71] : memref<3x11x64xf32, #tpu.memory_space<vmem>>, vector<1x11x64xf32>
    %203 = vector.shape_cast %202 : vector<1x11x64xf32> to vector<11x64xf32>
    %204 = vector.shape_cast %201 : vector<11x64xf32> to vector<1x11x64xf32>
    tpu.vector_store %arg11[%c1, %c0_70, %c0_71], %204 {strides = array<i32>} : memref<3x11x64xf32, #tpu.memory_space<vmem>>, vector<1x11x64xf32>,
    %205 = vector.extract_strided_slice %17 {offsets = [0, 1], sizes = [11, 1], strides = [1, 1]} : vector<11x3xf32> to vector<11x1xf32>
    %206 = vector.broadcast %205 : vector<11x1xf32> to vector<11x64xf32>
    %207 = arith.mulf %206, %201 : vector<11x64xf32>
    %208 = arith.addf %112, %207 : vector<11x64xf32>
    %209 = vector.extract_strided_slice %18 {offsets = [0, 1], sizes = [11, 1], strides = [1, 1]} : vector<11x3xf32> to vector<11x1xf32>
    %210 = vector.broadcast %209 : vector<11x1xf32> to vector<11x64xf32>
    %211 = arith.mulf %210, %201 : vector<11x64xf32>
    %212 = arith.addf %116, %211 : vector<11x64xf32>
    %213 = vector.extract_strided_slice %13 {offsets = [32, 0], sizes = [16, 128], strides = [1, 1]} : vector<48x128xf32> to vector<16x128xf32>
    %214 = vector.extract_strided_slice %14 {offsets = [2, 0], sizes = [1, 16], strides = [1, 1]} : vector<3x16xf32> to vector<1x16xf32>
    %cst_72 = arith.constant 0.000000e+00 : f32
    %215 = vector.broadcast %cst_72 : f32 to vector<11x64xf32>
    %216 = vector.extract_strided_slice %7 {offsets = [0, 0], sizes = [11, 16], strides = [1, 1]} : vector<11x64xf32> to vector<11x16xf32>
    %217 = vector.extract_strided_slice %213 {offsets = [0, 0], sizes = [16, 16], strides = [1, 1]} : vector<16x128xf32> to vector<16x16xf32>
    %218 = vector.extract_strided_slice %213 {offsets = [0, 64], sizes = [16, 16], strides = [1, 1]} : vector<16x128xf32> to vector<16x16xf32>
    %cst_73 = arith.constant dense<0.000000e+00> : vector<11x16xf32>
    %219 = tpu.matmul %216, %217, %cst_73 {dimension_numbers = #tpu.dot_dimension_numbers<[1], [1], [0], [0], [0, 0, 1, 0], [], []>} : vector<11x16xf32>, vector<16x16xf32>, vector<11x16xf32> -> vector<11x16xf32>
    %220 = vector.broadcast %214 : vector<1x16xf32> to vector<11x16xf32>
    %221 = arith.addf %219, %220 : vector<11x16xf32>
    %cst_74 = arith.constant dense<0xFF800000> : vector<11xf32>
    %222 = vector.multi_reduction <maximumf>, %221, %cst_74 [1] : vector<11x16xf32> to vector<11xf32>
    %223 = vector.shape_cast %222 : vector<11xf32> to vector<11x1xf32>
    %224 = vector.broadcast %223 : vector<11x1xf32> to vector<11x16xf32>
    %225 = arith.subf %221, %224 : vector<11x16xf32>
    %226 = math.exp %225 : vector<11x16xf32>
    %cst_75 = arith.constant dense<0.000000e+00> : vector<11xf32>
    %227 = vector.multi_reduction <add>, %226, %cst_75 [1] : vector<11x16xf32> to vector<11xf32>
    %228 = vector.shape_cast %227 : vector<11xf32> to vector<11x1xf32>
    %229 = tpu.reciprocal %228 {approx = true} : vector<11x1xf32> -> vector<11x1xf32>
    %230 = vector.broadcast %229 : vector<11x1xf32> to vector<11x16xf32>
    %231 = arith.mulf %226, %230 : vector<11x16xf32>
    %cst_76 = arith.constant dense<0.000000e+00> : vector<11x16xf32>
    %232 = tpu.matmul %231, %218, %cst_76 {dimension_numbers = #tpu.dot_dimension_numbers<[1], [0], [0], [1], [0, 0, 1, 1], [], []>} : vector<11x16xf32>, vector<16x16xf32>, vector<11x16xf32> -> vector<11x16xf32>
    %233 = vector.extract_strided_slice %15 {offsets = [0, 0], sizes = [16, 64], strides = [1, 1]} : vector<64x64xf32> to vector<16x64xf32>
    %cst_77 = arith.constant dense<0.000000e+00> : vector<11x64xf32>
    %234 = tpu.matmul %232, %233, %cst_77 {dimension_numbers = #tpu.dot_dimension_numbers<[1], [0], [0], [1], [0, 0, 1, 1], [], []>} : vector<11x16xf32>, vector<16x64xf32>, vector<11x64xf32> -> vector<11x64xf32>
    %235 = arith.addf %215, %234 : vector<11x64xf32>
    %236 = vector.extract_strided_slice %7 {offsets = [0, 16], sizes = [11, 16], strides = [1, 1]} : vector<11x64xf32> to vector<11x16xf32>
    %237 = vector.extract_strided_slice %213 {offsets = [0, 16], sizes = [16, 16], strides = [1, 1]} : vector<16x128xf32> to vector<16x16xf32>
    %238 = vector.extract_strided_slice %213 {offsets = [0, 80], sizes = [16, 16], strides = [1, 1]} : vector<16x128xf32> to vector<16x16xf32>
    %cst_78 = arith.constant dense<0.000000e+00> : vector<11x16xf32>
    %239 = tpu.matmul %236, %237, %cst_78 {dimension_numbers = #tpu.dot_dimension_numbers<[1], [1], [0], [0], [0, 0, 1, 0], [], []>} : vector<11x16xf32>, vector<16x16xf32>, vector<11x16xf32> -> vector<11x16xf32>
    %240 = vector.broadcast %214 : vector<1x16xf32> to vector<11x16xf32>
    %241 = arith.addf %239, %240 : vector<11x16xf32>
    %cst_79 = arith.constant dense<0xFF800000> : vector<11xf32>
    %242 = vector.multi_reduction <maximumf>, %241, %cst_79 [1] : vector<11x16xf32> to vector<11xf32>
    %243 = vector.shape_cast %242 : vector<11xf32> to vector<11x1xf32>
    %244 = vector.broadcast %243 : vector<11x1xf32> to vector<11x16xf32>
    %245 = arith.subf %241, %244 : vector<11x16xf32>
    %246 = math.exp %245 : vector<11x16xf32>
    %cst_80 = arith.constant dense<0.000000e+00> : vector<11xf32>
    %247 = vector.multi_reduction <add>, %246, %cst_80 [1] : vector<11x16xf32> to vector<11xf32>
    %248 = vector.shape_cast %247 : vector<11xf32> to vector<11x1xf32>
    %249 = tpu.reciprocal %248 {approx = true} : vector<11x1xf32> -> vector<11x1xf32>
    %250 = vector.broadcast %249 : vector<11x1xf32> to vector<11x16xf32>
    %251 = arith.mulf %246, %250 : vector<11x16xf32>
    %cst_81 = arith.constant dense<0.000000e+00> : vector<11x16xf32>
    %252 = tpu.matmul %251, %238, %cst_81 {dimension_numbers = #tpu.dot_dimension_numbers<[1], [0], [0], [1], [0, 0, 1, 1], [], []>} : vector<11x16xf32>, vector<16x16xf32>, vector<11x16xf32> -> vector<11x16xf32>
    %253 = vector.extract_strided_slice %15 {offsets = [16, 0], sizes = [16, 64], strides = [1, 1]} : vector<64x64xf32> to vector<16x64xf32>
    %cst_82 = arith.constant dense<0.000000e+00> : vector<11x64xf32>
    %254 = tpu.matmul %252, %253, %cst_82 {dimension_numbers = #tpu.dot_dimension_numbers<[1], [0], [0], [1], [0, 0, 1, 1], [], []>} : vector<11x16xf32>, vector<16x64xf32>, vector<11x64xf32> -> vector<11x64xf32>
    %255 = arith.addf %235, %254 : vector<11x64xf32>
    %256 = vector.extract_strided_slice %7 {offsets = [0, 32], sizes = [11, 16], strides = [1, 1]} : vector<11x64xf32> to vector<11x16xf32>
    %257 = vector.extract_strided_slice %213 {offsets = [0, 32], sizes = [16, 16], strides = [1, 1]} : vector<16x128xf32> to vector<16x16xf32>
    %258 = vector.extract_strided_slice %213 {offsets = [0, 96], sizes = [16, 16], strides = [1, 1]} : vector<16x128xf32> to vector<16x16xf32>
    %cst_83 = arith.constant dense<0.000000e+00> : vector<11x16xf32>
    %259 = tpu.matmul %256, %257, %cst_83 {dimension_numbers = #tpu.dot_dimension_numbers<[1], [1], [0], [0], [0, 0, 1, 0], [], []>} : vector<11x16xf32>, vector<16x16xf32>, vector<11x16xf32> -> vector<11x16xf32>
    %260 = vector.broadcast %214 : vector<1x16xf32> to vector<11x16xf32>
    %261 = arith.addf %259, %260 : vector<11x16xf32>
    %cst_84 = arith.constant dense<0xFF800000> : vector<11xf32>
    %262 = vector.multi_reduction <maximumf>, %261, %cst_84 [1] : vector<11x16xf32> to vector<11xf32>
    %263 = vector.shape_cast %262 : vector<11xf32> to vector<11x1xf32>
    %264 = vector.broadcast %263 : vector<11x1xf32> to vector<11x16xf32>
    %265 = arith.subf %261, %264 : vector<11x16xf32>
    %266 = math.exp %265 : vector<11x16xf32>
    %cst_85 = arith.constant dense<0.000000e+00> : vector<11xf32>
    %267 = vector.multi_reduction <add>, %266, %cst_85 [1] : vector<11x16xf32> to vector<11xf32>
    %268 = vector.shape_cast %267 : vector<11xf32> to vector<11x1xf32>
    %269 = tpu.reciprocal %268 {approx = true} : vector<11x1xf32> -> vector<11x1xf32>
    %270 = vector.broadcast %269 : vector<11x1xf32> to vector<11x16xf32>
    %271 = arith.mulf %266, %270 : vector<11x16xf32>
    %cst_86 = arith.constant dense<0.000000e+00> : vector<11x16xf32>
    %272 = tpu.matmul %271, %258, %cst_86 {dimension_numbers = #tpu.dot_dimension_numbers<[1], [0], [0], [1], [0, 0, 1, 1], [], []>} : vector<11x16xf32>, vector<16x16xf32>, vector<11x16xf32> -> vector<11x16xf32>
    %273 = vector.extract_strided_slice %15 {offsets = [32, 0], sizes = [16, 64], strides = [1, 1]} : vector<64x64xf32> to vector<16x64xf32>
    %cst_87 = arith.constant dense<0.000000e+00> : vector<11x64xf32>
    %274 = tpu.matmul %272, %273, %cst_87 {dimension_numbers = #tpu.dot_dimension_numbers<[1], [0], [0], [1], [0, 0, 1, 1], [], []>} : vector<11x16xf32>, vector<16x64xf32>, vector<11x64xf32> -> vector<11x64xf32>
    %275 = arith.addf %255, %274 : vector<11x64xf32>
    %276 = vector.extract_strided_slice %7 {offsets = [0, 48], sizes = [11, 16], strides = [1, 1]} : vector<11x64xf32> to vector<11x16xf32>
    %277 = vector.extract_strided_slice %213 {offsets = [0, 48], sizes = [16, 16], strides = [1, 1]} : vector<16x128xf32> to vector<16x16xf32>
    %278 = vector.extract_strided_slice %213 {offsets = [0, 112], sizes = [16, 16], strides = [1, 1]} : vector<16x128xf32> to vector<16x16xf32>
    %cst_88 = arith.constant dense<0.000000e+00> : vector<11x16xf32>
    %279 = tpu.matmul %276, %277, %cst_88 {dimension_numbers = #tpu.dot_dimension_numbers<[1], [1], [0], [0], [0, 0, 1, 0], [], []>} : vector<11x16xf32>, vector<16x16xf32>, vector<11x16xf32> -> vector<11x16xf32>
    %280 = vector.broadcast %214 : vector<1x16xf32> to vector<11x16xf32>
    %281 = arith.addf %279, %280 : vector<11x16xf32>
    %cst_89 = arith.constant dense<0xFF800000> : vector<11xf32>
    %282 = vector.multi_reduction <maximumf>, %281, %cst_89 [1] : vector<11x16xf32> to vector<11xf32>
    %283 = vector.shape_cast %282 : vector<11xf32> to vector<11x1xf32>
    %284 = vector.broadcast %283 : vector<11x1xf32> to vector<11x16xf32>
    %285 = arith.subf %281, %284 : vector<11x16xf32>
    %286 = math.exp %285 : vector<11x16xf32>
    %cst_90 = arith.constant dense<0.000000e+00> : vector<11xf32>
    %287 = vector.multi_reduction <add>, %286, %cst_90 [1] : vector<11x16xf32> to vector<11xf32>
    %288 = vector.shape_cast %287 : vector<11xf32> to vector<11x1xf32>
    %289 = tpu.reciprocal %288 {approx = true} : vector<11x1xf32> -> vector<11x1xf32>
    %290 = vector.broadcast %289 : vector<11x1xf32> to vector<11x16xf32>
    %291 = arith.mulf %286, %290 : vector<11x16xf32>
    %cst_91 = arith.constant dense<0.000000e+00> : vector<11x16xf32>
    %292 = tpu.matmul %291, %278, %cst_91 {dimension_numbers = #tpu.dot_dimension_numbers<[1], [0], [0], [1], [0, 0, 1, 1], [], []>} : vector<11x16xf32>, vector<16x16xf32>, vector<11x16xf32> -> vector<11x16xf32>
    %293 = vector.extract_strided_slice %15 {offsets = [48, 0], sizes = [16, 64], strides = [1, 1]} : vector<64x64xf32> to vector<16x64xf32>
    %cst_92 = arith.constant dense<0.000000e+00> : vector<11x64xf32>
    %294 = tpu.matmul %292, %293, %cst_92 {dimension_numbers = #tpu.dot_dimension_numbers<[1], [0], [0], [1], [0, 0, 1, 1], [], []>} : vector<11x16xf32>, vector<16x64xf32>, vector<11x64xf32> -> vector<11x64xf32>
    %295 = arith.addf %275, %294 : vector<11x64xf32>
    %296 = vector.broadcast %16 : vector<1x64xf32> to vector<11x64xf32>
    %297 = arith.addf %295, %296 : vector<11x64xf32>
    %c2 = arith.constant 2 : index
    %c0_93 = arith.constant 0 : index
    %c0_94 = arith.constant 0 : index
    %298 = vector.load %arg11[%c2, %c0_93, %c0_94] : memref<3x11x64xf32, #tpu.memory_space<vmem>>, vector<1x11x64xf32>
    %299 = vector.shape_cast %298 : vector<1x11x64xf32> to vector<11x64xf32>
    %300 = vector.shape_cast %297 : vector<11x64xf32> to vector<1x11x64xf32>
    tpu.vector_store %arg11[%c2, %c0_93, %c0_94], %300 {strides = array<i32>} : memref<3x11x64xf32, #tpu.memory_space<vmem>>, vector<1x11x64xf32>,
    %301 = vector.extract_strided_slice %17 {offsets = [0, 2], sizes = [11, 1], strides = [1, 1]} : vector<11x3xf32> to vector<11x1xf32>
    %302 = vector.broadcast %301 : vector<11x1xf32> to vector<11x64xf32>
    %303 = arith.mulf %302, %297 : vector<11x64xf32>
    %304 = arith.addf %208, %303 : vector<11x64xf32>
    %305 = vector.extract_strided_slice %18 {offsets = [0, 2], sizes = [11, 1], strides = [1, 1]} : vector<11x3xf32> to vector<11x1xf32>
    %306 = vector.broadcast %305 : vector<11x1xf32> to vector<11x64xf32>
    %307 = arith.mulf %306, %297 : vector<11x64xf32>
    %308 = arith.addf %212, %307 : vector<11x64xf32>
    %309 = arith.mulf %0, %0 : vector<11x64xf32>
    %cst_95 = arith.constant dense<0.000000e+00> : vector<11xf32>
    %310 = vector.multi_reduction <add>, %309, %cst_95 [1] : vector<11x64xf32> to vector<11xf32>
    %311 = vector.shape_cast %310 : vector<11xf32> to vector<11x1xf32>
    %cst_96 = arith.constant 1.000000e-24 : f32
    %312 = vector.broadcast %cst_96 : f32 to vector<11x1xf32>
    %313 = arith.maximumf %311, %312 : vector<11x1xf32>
    %314 = math.rsqrt %313 : vector<11x1xf32>
    %315 = vector.broadcast %314 : vector<11x1xf32> to vector<11x64xf32>
    %316 = arith.mulf %0, %315 : vector<11x64xf32>
    %317 = arith.mulf %304, %304 : vector<11x64xf32>
    %cst_97 = arith.constant dense<0.000000e+00> : vector<11xf32>
    %318 = vector.multi_reduction <add>, %317, %cst_97 [1] : vector<11x64xf32> to vector<11xf32>
    %319 = vector.shape_cast %318 : vector<11xf32> to vector<11x1xf32>
    %cst_98 = arith.constant 1.000000e-24 : f32
    %320 = vector.broadcast %cst_98 : f32 to vector<11x1xf32>
    %321 = arith.maximumf %319, %320 : vector<11x1xf32>
    %322 = math.rsqrt %321 : vector<11x1xf32>
    %323 = vector.broadcast %322 : vector<11x1xf32> to vector<11x64xf32>
    %324 = arith.mulf %304, %323 : vector<11x64xf32>
    %325 = arith.mulf %316, %324 : vector<11x64xf32>
    %cst_99 = arith.constant dense<0.000000e+00> : vector<11xf32>
    %326 = vector.multi_reduction <add>, %325, %cst_99 [1] : vector<11x64xf32> to vector<11xf32>
    %327 = vector.shape_cast %326 : vector<11xf32> to vector<11x1xf32>
    %328 = arith.mulf %308, %308 : vector<11x64xf32>
    %cst_100 = arith.constant dense<0.000000e+00> : vector<11xf32>
    %329 = vector.multi_reduction <add>, %328, %cst_100 [1] : vector<11x64xf32> to vector<11xf32>
    %330 = vector.shape_cast %329 : vector<11xf32> to vector<11x1xf32>
    %cst_101 = arith.constant 1.000000e-24 : f32
    %331 = vector.broadcast %cst_101 : f32 to vector<11x1xf32>
    %332 = arith.maximumf %330, %331 : vector<11x1xf32>
    %333 = math.rsqrt %332 : vector<11x1xf32>
    %334 = vector.broadcast %333 : vector<11x1xf32> to vector<11x64xf32>
    %335 = arith.mulf %308, %334 : vector<11x64xf32>
    %336 = arith.mulf %316, %335 : vector<11x64xf32>
    %cst_102 = arith.constant dense<0.000000e+00> : vector<11xf32>
    %337 = vector.multi_reduction <add>, %336, %cst_102 [1] : vector<11x64xf32> to vector<11xf32>
    %338 = vector.shape_cast %337 : vector<11xf32> to vector<11x1xf32>
    %339 = vector.shape_cast %338 : vector<11x1xf32> to vector<1x11x1xf32>
    %cst_103 = arith.constant dense<0.000000e+00> : vector<1xf32>
    %340 = vector.multi_reduction <add>, %339, %cst_103 [1, 2] : vector<1x11x1xf32> to vector<1xf32>
    %341 = vector.shape_cast %340 : vector<1xf32> to vector<1x1x1xf32>
    %342 = vector.extract %341[0, 0, 0] : f32 from vector<1x1x1xf32>
    %cst_104 = arith.constant 1.100000e+01 : f32
    %343 = arith.divf %342, %cst_104 : f32
    %cst_105 = arith.constant 5.000000e-01 : f32
    %344 = arith.addf %cst_105, %343 : f32
    %345 = vector.shape_cast %327 : vector<11x1xf32> to vector<1x11x1xf32>
    %cst_106 = arith.constant dense<0.000000e+00> : vector<1xf32>
    %346 = vector.multi_reduction <add>, %345, %cst_106 [1, 2] : vector<1x11x1xf32> to vector<1xf32>
    %347 = vector.shape_cast %346 : vector<1xf32> to vector<1x1x1xf32>
    %348 = vector.extract %347[0, 0, 0] : f32 from vector<1x1x1xf32>
    %cst_107 = arith.constant 1.100000e+01 : f32
    %349 = arith.divf %348, %cst_107 : f32
    %350 = arith.subf %344, %349 : f32
    %cst_108 = arith.constant 0.000000e+00 : f32
    %351 = arith.maximumf %350, %cst_108 : f32
    %c0_109 = arith.constant 0 : index
    %c0_110 = arith.constant 0 : index
    %352 = memref.load %arg12[%c0_109, %c0_110] : memref<1x1xf32, #tpu.memory_space<smem>>
    memref.store %351, %arg12[%c0_109, %c0_110] : memref<1x1xf32, #tpu.memory_space<smem>>
    return
  }
}

</mosaic_0001>

<bundles_post_ra>
// kernel: tpu_custom_call.1
= control target key start
LH: loop header
LB: loop body
LE: loop exit
PB: predicated region body
PF: predicated region fallthrough
CT: control target
= control target key end

     0   :  { %18 = vsyncpa [#allocation3], 0  ;;  %s6426_s0 = inlined_call_operand.hbm [shape: f32[11,64], index: 0, kind: input, shape index: {}]   ;;  %s6427_s1 = inlined_call_operand.hbm [shape: bf16[48,768], index: 1, kind: input, shape index: {}]   ;;  %s6428_s2 = inlined_call_operand.vmem [shape: f32[3,16], index: 2, kind: input, shape index: {}]   ;;  %s6429_s3 = inlined_call_operand.vmem [shape: f32[11,3], index: 3, kind: input, shape index: {}]   ;;  %s6430_s4 = inlined_call_operand.vmem [shape: f32[11,3], index: 4, kind: input, shape index: {}]   ;;  %s6431_s5 = inlined_call_operand.hbm [shape: f32[64,64], index: 5, kind: input, shape index: {}]   ;;  %s6432_s6 = inlined_call_operand.vmem [shape: f32[1,64], index: 6, kind: input, shape index: {}]   ;;  %s6433_s7 = inlined_call_operand.hbm [shape: bf16[768,128], index: 7, kind: input, shape index: {}]   ;;  %s6434_s8 = inlined_call_operand.vmem [shape: f32[1,128], index: 8, kind: input, shape index: {}]   ;;  %s6435_s9 = inlined_call_operand.vmem [shape: f32[64,64], index: 9, kind: input, shape index: {}]   ;;  %s6436_s10 = inlined_call_operand.vmem [shape: f32[1,64], index: 10, kind: input, shape index: {}]   ;;  %s6437_s11 = inlined_call_operand.vmem [shape: f32[3,11,64], index: 11, kind: output, shape index: {0}]   ;;  %s6438_s12 = inlined_call_operand.hbm [shape: f32[1,1], index: 12, kind: output, shape index: {1}]  }
   0x1   :  { %19 = vsyncpa [#allocation6], 0 }
   0x2   :  { %20 = vsyncpa [#allocation9], 0 }
   0x3   :  { %21 = vsyncpa [#allocation4], 0  ;;  %s5748_s21 = smov [#allocation5]   ;;  %s5642_s25 = scalar_lea.hbm %s6427_s1, 2304 }
   0x4   :  { %s39_s22 = sshll.u32 %s5748_s21, 4  ;;  %p5643_p0 = scmp.ne.s32.totalorder %s6427_s1, %s5642_s25  ;;  %s40_s22 = int_to_ptr.vmem [resolvable:$true] %s39_s22 }
   0x5   :  { %p5646_p1 = scmp.lt.u32.totalorder %s5642_s25, %s6427_s1 }
   0x7   :  { %p5648_p2 = pnand %p5646_p1, %p5643_p0 }
   0x9   :  { %5651 = shalt.err (!%p5648_p2)
}
   0xa   :  { %s5652_s30 = scalar_lea.vmem %s40_s22, 2304  ;;  %p5657_p4 = scmp.lt.s32.totalorder %s40_s22, %s40_s22 }
   0xb   :  { %p5653_p3 = scmp.ne.s32.totalorder %s40_s22, %s5652_s30  ;;  %p5658_p5 = scmp.lt.s32.totalorder %s5652_s30, %s5652_s30 }
   0xd   :  { %p5659_p6 = por %p5658_p5, %p5657_p4 }
   0xf   :  { %p5660_p7 = pnand %p5659_p6, %p5653_p3 }
  0x11   :  { %5663 = shalt.err (!%p5660_p7)
}
  0x12   :  { %s5749_s13 = smov 384   ;;  %s5750_s14 = smov 24  }
  0x13   :  { %45 = dma.hbm_to_vmem [thread:$0]  %s6427_s1, 2304, %s40_s22, [#allocation6], %s5749_s13, %s5749_s13, %s5750_s14  }
  0x14   :  { %s5751_s17 = smov [#allocation2]   ;;  %s5664_s21 = scalar_lea.hbm %s6426_s0, 256 }
  0x15   :  { %s27_s18 = sshll.u32 %s5751_s17, 4  ;;  %p5665_p8 = scmp.ne.s32.totalorder %s6426_s0, %s5664_s21  ;;  %s28_s18 = int_to_ptr.vmem [resolvable:$true] %s27_s18 }
  0x16   :  { %p5668_p9 = scmp.lt.u32.totalorder %s5664_s21, %s6426_s0 }
  0x18   :  { %p5670_p10 = pnand %p5668_p9, %p5665_p8 }
  0x1a   :  { %5673 = shalt.err (!%p5670_p10)
}
  0x1b   :  { %s5674_s27 = scalar_lea.vmem %s28_s18, 256  ;;  %p5679_p12 = scmp.lt.s32.totalorder %s28_s18, %s28_s18 }
  0x1c   :  { %p5675_p11 = scmp.ne.s32.totalorder %s28_s18, %s5674_s27  ;;  %p5680_p13 = scmp.lt.s32.totalorder %s5674_s27, %s5674_s27 }
  0x1e   :  { %p5681_p0 = por %p5680_p13, %p5679_p12 }
  0x20   :  { %p5682_p1 = pnand %p5681_p0, %p5675_p11 }
  0x22   :  { %5685 = shalt.err (!%p5682_p1)
}
  0x23   :  { %s5752_s1 = smov 128   ;;  %s5753_s22 = smov 8  }
  0x24   :  { %33 = dma.hbm_to_vmem [thread:$0]  %s6426_s0, 256, %s28_s18, [#allocation3], %s5752_s1, %s5752_s1, %s5753_s22  }
  0x25   :  { %s5754_s30 = smov [#allocation7]   ;;  %s5755_s14 = smov [#allocation8]  }
  0x26   :  { %s57_s13 = sshll.u32 %s5754_s30, 4  ;;  %s71_s15 = sshll.u32 %s5755_s14, 4  ;;  %s58_s13 = int_to_ptr.vmem [resolvable:$true] %s57_s13  ;;  %s5858_s15 = int_to_ptr.vmem [resolvable:$true] %s71_s15 }
  0x27   :  { %s5686_s19 = scalar_lea.hbm %s6431_s5, 1024 }
  0x28   :  { %p5687_p2 = scmp.ne.s32.totalorder %s6431_s5, %s5686_s19  ;;  %p5690_p3 = scmp.lt.u32.totalorder %s5686_s19, %s6431_s5 }
  0x2a   :  { %p5692_p4 = pnand %p5690_p3, %p5687_p2 }
  0x2c   :  { %5695 = shalt.err (!%p5692_p4)
}
  0x2d   :  { %s5696_s0 = scalar_lea.vmem %s58_s13, 1024  ;;  %p5701_p6 = scmp.lt.s32.totalorder %s58_s13, %s58_s13 }
  0x2e   :  { %p5697_p5 = scmp.ne.s32.totalorder %s58_s13, %s5696_s0  ;;  %p5702_p7 = scmp.lt.s32.totalorder %s5696_s0, %s5696_s0 }
  0x30   :  { %p5703_p8 = por %p5702_p7, %p5701_p6 }
  0x32   :  { %p5704_p9 = pnand %p5703_p8, %p5697_p5 }
  0x34   :  { %5707 = shalt.err (!%p5704_p9)
}
  0x35   :  { %63 = dma.hbm_to_vmem [thread:$0]  %s6431_s5, 1024, %s58_s13, [#allocation6], %s5752_s1, %s5752_s1, %s5753_s22  }
  0x36   :  { %s5708_s28 = scalar_lea.hbm %s6433_s7, 6144 }
  0x37   :  { %p5709_p10 = scmp.ne.s32.totalorder %s6433_s7, %s5708_s28  ;;  %p5712_p11 = scmp.lt.u32.totalorder %s5708_s28, %s6433_s7 }
  0x39   :  { %p5714_p12 = pnand %p5712_p11, %p5709_p10 }
  0x3b   :  { %5717 = shalt.err (!%p5714_p12)
}
  0x3c   :  { %s5718_s17 = scalar_lea.vmem %s5858_s15, 6144  ;;  %p5723_p0 = scmp.lt.s32.totalorder %s5858_s15, %s5858_s15 }
  0x3d   :  { %p5719_p13 = scmp.ne.s32.totalorder %s5858_s15, %s5718_s17  ;;  %p5724_p1 = scmp.lt.s32.totalorder %s5718_s17, %s5718_s17 }
  0x3f   :  { %p5725_p2 = por %p5724_p1, %p5723_p0 }
  0x41   :  { %p5726_p3 = pnand %p5725_p2, %p5719_p13 }
  0x43   :  { %5729 = shalt.err (!%p5726_p3)
}
  0x44   :  { %s5756_s5 = smov 64   ;;  %s5757_s1 = smov 4  }
  0x45   :  { %77 = dma.hbm_to_vmem [thread:$0]  %s6433_s7, 6144, %s5858_s15, [#allocation9], %s5756_s5, %s5756_s5, %s5757_s1  }
  0x46   :  { %5740 = dma.done.wait [#allocation3], 256  }
  0x47   :  { %5741 = vsyncadd [#allocation3], 4294967040 }
  0x48   :  { %5742 = dma.done.wait [#allocation6], 3328  }
  0x49   :  { %5743 = vsyncadd [#allocation6], 4294963968 }
  0x4a   :  { %5744 = dma.done.wait [#allocation9], 6144  }
  0x4b   :  { %5745 = vsyncadd [#allocation9], 4294961152  ;;  %v99_v0 = vld [vmem:[#allocation7] sm:$0xff]  ;;  %v100_v1 = vld [vmem:[#allocation7 + $0x8] sm:$0xff]  ;;  %vm114_vm0 = vcmask 523264   ;;  %vm886_vm1 = vcmask 130048  }
  0x4c   :  { %v5118_v2 = vpack.c.bf16 %v100_v1, %v99_v0  ;;  %v5457_v3 = vld [vmem:[#allocation8 + $0x40] sm:$0xff]   ;;  %v101_v5 = vld [vmem:[#allocation7 + $0x10] sm:$0xff]  ;;  %v102_v6 = vld [vmem:[#allocation7 + $0x18] sm:$0xff]  ;;  %vm977_vm3 = vcmask 124928   ;;  %s5760_s23 = smov 80   ;;  %s5761_s24 = smov 48  }
  0x4d   :  { %v5458_v4 = vld [vmem:[#allocation8] sm:$0xff]   ;;  %4601 = vmatprep.subr.bf16.mxu1 %v5457_v3  ;;  %v5122_v7 = vpack.c.bf16 %v102_v6, %v101_v5  ;;  %v5459_v8 = vld [vmem:[#allocation8 + $0x48] sm:$0xff]   ;;  %v5461_v13 = vld [vmem:[#allocation8 + $0x50] sm:$0xff]   ;;  %s5762_s14 = smov 32   ;;  %s5763_s16 = smov 16   ;;  %vm2021_vm4 = vcmask 518144  }
  0x4e   :  { %5119 = vmatprep.subr.bf16.mxu0 %v5118_v2  ;;  %4602 = vmatpush3.bf16.msra.mxu1 %v5458_v4  ;;  %v5460_v9 = vld [vmem:[#allocation8 + $0x8] sm:$0xff]   ;;  %v103_v10 = vld [vmem:[#allocation7 + $0x20] sm:$0xff]  ;;  %v5462_v14 = vld [vmem:[#allocation8 + $0x10] sm:$0xff]   ;;  %vm4365_vm5 = vcmask 2048   ;;  %vm4363_vm6 = vcmask 7168  }
  0x4f   :  { %5121 = vmatpush3.bf16.msra.mxu0 %v5118_v2  ;;  %v104_v11 = vld [vmem:[#allocation7 + $0x28] sm:$0xff]  ;;  %4603 = vmatprep.subr.bf16.mxu1 %v5459_v8  ;;  %v105_v15 = vld [vmem:[#allocation7 + $0x30] sm:$0xff]  ;;  %v106_v16 = vld [vmem:[#allocation7 + $0x38] sm:$0xff] }
  0x50   :  { %5123 = vmatprep.subr.bf16.mxu0 %v5122_v7  ;;  %v5126_v12 = vpack.c.bf16 %v104_v11, %v103_v10  ;;  %v5130_v17 = vpack.c.bf16 %v106_v16, %v105_v15  ;;  %v5463_v18 = vld [vmem:[#allocation8 + $0x58] sm:$0xff]   ;;  %v97_v19 = vld [vmem:[#allocation2] sm:$0xff]  ;;  %v98_v23 = vld [vmem:[#allocation2 + $0x8] sm:$0x7] }
  0x51   :  { %v5464_v20 = vld [vmem:[#allocation8 + $0x18] sm:$0xff]   ;;  %4863 = vmatprep.mubr.msk.f32.mxu0 %vm114_vm0, %v97_v19  ;;  %v5465_v21 = vld [vmem:[#allocation8 + $0x60] sm:$0xff]   ;;  %v5469_v26 = vld [vmem:[#allocation8 + $0x68] sm:$0xff]  }
  0x52   :  { %4604 = vmatpush3.bf16.msra.mxu1 %v5460_v9  ;;  %v5466_v22 = vld [vmem:[#allocation8 + $0xc0] sm:$0xff]   ;;  %v5470_v27 = vld [vmem:[#allocation8 + $0xc8] sm:$0xff]   ;;  %v5473_v30 = vld [vmem:[#allocation8 + $0x70] sm:$0xff]  }
  0x53   :  { %5125 = vmatpush3.bf16.msra.mxu0 %v5122_v7  ;;  %4605 = vmatprep.subr.bf16.mxu1 %v5461_v13  ;;  %v5467_v24 = vld [vmem:[#allocation8 + $0x20] sm:$0xff]   ;;  %v5471_v28 = vld [vmem:[#allocation8 + $0x28] sm:$0xff]   ;;  %v5474_v31 = vld [vmem:[#allocation8 + $0xd0] sm:$0xff]  }
  0x54   :  { %5127 = vmatprep.subr.bf16.mxu0 %v5126_v12  ;;  %v5468_v25 = vld [vmem:[#allocation8 + $0x80] sm:$0xff]   ;;  %v5472_v29 = vld [vmem:[#allocation8 + $0x88] sm:$0xff]   ;;  %v5475_v32 = vld [vmem:[#allocation8 + $0x30] sm:$0xff]  }
  0x55   :  { %v5476_v33 = vld [vmem:[#allocation8 + $0x90] sm:$0xff]   ;;  %v5477_v34 = vld [vmem:[#allocation8 + $0x78] sm:$0xff]   ;;  %v5484_v40 = vld [vmem:[#allocation8 + $0xe0] sm:$0xff]  }
  0x56   :  { %4606 = vmatpush3.bf16.msra.mxu1 %v5462_v14  ;;  %v5478_v35 = vld [vmem:[#allocation8 + $0xd8] sm:$0xff]   ;;  %v5483_v38 = vld [vmem:[#allocation5 + $0x4] ss:$24 sps:$4 sm:$0xff]   ;;  %v5481_v39 = vld [vmem:[#allocation5] ss:$24 sps:$4 sm:$0xff]  }
  0x57   :  { %5129 = vmatpush3.bf16.msra.mxu0 %v5126_v12  ;;  %4607 = vmatprep.subr.bf16.mxu1 %v5463_v18  ;;  %v5479_v36 = vld [vmem:[#allocation8 + $0x38] sm:$0xff]   ;;  %v5485_v41 = vld [vmem:[#allocation8 + $0x140] sm:$0xff]   ;;  %v5488_v44 = vld [vmem:[#allocation8 + $0xe8] sm:$0xff]  }
  0x58   :  { %5131 = vmatprep.subr.bf16.mxu0 %v5130_v17  ;;  %v5480_v37 = vld [vmem:[#allocation8 + $0x98] sm:$0xff]   ;;  %729 = vmatprep.mubr.bf16.mxu1 %v5483_v38  ;;  %v5486_v42 = vld [vmem:[#allocation8 + $0xa0] sm:$0xff]   ;;  %v5489_v45 = vld [vmem:[#allocation8 + $0x148] sm:$0xff]  }
  0x59   :  { %v5487_v43 = vld [vmem:[#allocation8 + $0x100] sm:$0xff]   ;;  %v5490_v46 = vld [vmem:[#allocation8 + $0xa8] sm:$0xff]   ;;  %v5492_v48 = vld [vmem:[#allocation8 + $0xf0] sm:$0xff]  }
  0x5a   :  { %4608 = vmatpush3.bf16.msra.mxu1 %v5464_v20  ;;  %v5491_v47 = vld [vmem:[#allocation8 + $0x108] sm:$0xff]   ;;  %v5493_v49 = vld [vmem:[#allocation8 + $0x150] sm:$0xff]   ;;  %v5496_v52 = vld [vmem:[#allocation5 + $0x34] ss:$24 sps:$4 sm:$0xff]  }
  0x5b   :  { %5133 = vmatpush3.bf16.msra.mxu0 %v5130_v17  ;;  %4609 = vmatprep.subr.bf16.mxu1 %v5465_v21  ;;  %v5494_v50 = vld [vmem:[#allocation8 + $0xb0] sm:$0xff]   ;;  %v5498_v53 = vld [vmem:[#allocation8 + $0xf8] sm:$0xff]   ;;  %v5506_v60 = vld [vmem:[#allocation8 + $0x160] sm:$0xff]  }
  0x5c   :  { %4635 = vmatprep.subr.bf16.mxu0 %v5466_v22  ;;  %v5495_v51 = vld [vmem:[#allocation8 + $0x110] sm:$0xff]   ;;  %v5499_v54 = vld [vmem:[#allocation8 + $0x158] sm:$0xff]   ;;  %v5507_v61 = vld [vmem:[#allocation8 + $0x120] sm:$0xff]  }
  0x5d   :  { %v5500_v55 = vld [vmem:[#allocation5 + $0x30] ss:$24 sps:$4 sm:$0xff]   ;;  %v5505_v59 = vld [vmem:[#allocation5 + $0xc] ss:$24 sps:$4 sm:$0xff]   ;;  %v5510_v63 = vld [vmem:[#allocation8 + $0x168] sm:$0xff]  }
  0x5e   :  { %4864 = vmatmul.mubr.msk.f32.vlgmr.msra.gmra.mrb[0].mxu0 %vm114_vm0, %v98_v23  ;;  %4610 = vmatpush3.bf16.msra.mxu1 %v5467_v24  ;;  %v5501_v56 = vld [vmem:[#allocation8 + $0xb8] sm:$0xff]   ;;  %v5508_v62 = vld [vmem:[#allocation5 + $0x64] ss:$24 sps:$4 sm:$0xff]   ;;  %v5511_v0 = vld [vmem:[#allocation5 + $0x60] ss:$24 sps:$4 sm:$0xff]  }
  0x5f   :  { %4636 = vmatpush3.bf16.msra.mxu0 %v5468_v25  ;;  %4611 = vmatprep.subr.bf16.mxu1 %v5469_v26  ;;  %v5502_v57 = vld [vmem:[#allocation8 + $0x118] sm:$0xff]   ;;  %v5512_v1 = vld [vmem:[#allocation8 + $0x128] sm:$0xff]   ;;  %v5516_v3 = vld [vmem:[#allocation8 + $0x170] sm:$0xff]  }
  0x60   :  { %4637 = vmatprep.subr.bf16.mxu0 %v5470_v27  ;;  %v5503_v58 = vld [vmem:[#allocation5 + $0x8] ss:$24 sps:$4 sm:$0xff]   ;;  %786 = vmatprep.mubr.bf16.mxu0 %v5505_v59  ;;  %v5513_v2 = vld [vmem:[#allocation5 + $0x3c] ss:$24 sps:$4 sm:$0xff]   ;;  %v5515_v4 = vld [vmem:[#allocation5 + $0x38] ss:$24 sps:$4 sm:$0xff]  }
  0x61   :  { %v5517_v5 = vld [vmem:[#allocation8 + $0x130] sm:$0xff]   ;;  %v5518_v6 = vld [vmem:[#allocation8 + $0x178] sm:$0xff]   ;;  %v5896_v16 = vld [vmem:[%s6432_s6] ss:$0 sm:$0xff]  ;;  %s5767_s6 = smov 0.0  }
  0x62   :  { %4612 = vmatpush3.bf16.msra.mxu1 %v5471_v28  ;;  %v5520_v7 = vld [vmem:[#allocation5 + $0x6c] ss:$24 sps:$4 sm:$0xff]   ;;  %v5522_v10 = vld [vmem:[#allocation5 + $0x10] ss:$24 sps:$4 sm:$0xff]   ;;  %v5528_v13 = vld [vmem:[#allocation5 + $0x40] ss:$24 sps:$4 sm:$0xff]  }
  0x63   :  { %4638 = vmatpush3.bf16.msra.mxu0 %v5472_v29  ;;  %4613 = vmatprep.subr.bf16.mxu1 %v5473_v30  ;;  %v5519_v8 = vld [vmem:[#allocation8 + $0x138] sm:$0xff]   ;;  %v5526_v12 = vld [vmem:[#allocation5 + $0x44] ss:$24 sps:$4 sm:$0xff]   ;;  %vm5910_vm2 = vmpackc.low %vm886_vm1, %vm886_vm1 }
  0x64   :  { %4639 = vmatprep.subr.bf16.mxu0 %v5474_v31  ;;  %v5524_v9 = vld [vmem:[#allocation5 + $0x14] ss:$24 sps:$4 sm:$0xff]   ;;  %v5525_v11 = vld [vmem:[#allocation5 + $0x68] ss:$24 sps:$4 sm:$0xff]   ;;  %v4423_v31 = vld [vmem:[%s6434_s8] ss:$0 sm:$0xff] }
  0x65   :  { %v5529_v14 = vld [vmem:[#allocation5 + $0x74] ss:$24 sps:$4 sm:$0xff]   ;;  %v5531_v15 = vld [vmem:[#allocation5 + $0x70] ss:$24 sps:$4 sm:$0xff]   ;;  %s5758_s8 = smov 112  }
  0x66   :  { %4614 = vmatpush3.bf16.msra.mxu1 %v5475_v32 }
  0x67   :  { %4640 = vmatpush3.bf16.msra.mxu0 %v5476_v33  ;;  %4615 = vmatprep.subr.bf16.mxu1 %v5477_v34 }
  0x68   :  { %4641 = vmatprep.subr.bf16.mxu0 %v5478_v35 }
  0x6a   :  { %4616 = vmatpush3.bf16.msra.mxu1 %v5479_v36 }
  0x6b   :  { %4642 = vmatpush3.bf16.msra.mxu0 %v5480_v37  ;;  %4669 = vmatprep.subr.bf16.mxu1 %v5485_v41 }
  0x6c   :  { %4643 = vmatprep.subr.bf16.mxu0 %v5484_v40 }
  0x6d   :  { %730 = vmatmul.mubr.bf16.vlgmr.msra.gmra.mrb[0].mxu1 %v5481_v39 }
  0x6e   :  { %4670 = vmatpush3.bf16.msra.mxu1 %v5487_v43  ;;  %737 = vmatprep.mubr.bf16.mxu1 %v5496_v52 }
  0x6f   :  { %4644 = vmatpush3.bf16.msra.mxu0 %v5486_v42  ;;  %4671 = vmatprep.subr.bf16.mxu1 %v5489_v45 }
  0x70   :  { %4645 = vmatprep.subr.bf16.mxu0 %v5488_v44 }
  0x72   :  { %4672 = vmatpush3.bf16.msra.mxu1 %v5491_v47 }
  0x73   :  { %4646 = vmatpush3.bf16.msra.mxu0 %v5490_v46  ;;  %4673 = vmatprep.subr.bf16.mxu1 %v5493_v49 }
  0x74   :  { %4647 = vmatprep.subr.bf16.mxu0 %v5492_v48 }
  0x75   :  { %738 = vmatmul.mubr.bf16.gmra.mrb[4].mxu1 %v5500_v55 }
  0x76   :  { %4674 = vmatpush3.bf16.msra.mxu1 %v5495_v51  ;;  %745 = vmatprep.mubr.bf16.mxu1 %v5508_v62 }
  0x77   :  { %4648 = vmatpush3.bf16.msra.mxu0 %v5494_v50  ;;  %4675 = vmatprep.subr.bf16.mxu1 %v5499_v54 }
  0x78   :  { %4649 = vmatprep.subr.bf16.mxu0 %v5498_v53 }
  0x7a   :  { %4676 = vmatpush3.bf16.msra.mxu1 %v5502_v57 }
  0x7b   :  { %4650 = vmatpush3.bf16.msra.mxu0 %v5501_v56  ;;  %4677 = vmatprep.subr.bf16.mxu1 %v5506_v60 }
  0x7d   :  { %746 = vmatmul.mubr.bf16.gmra.mrb[8].mxu1 %v5511_v0 }
  0x7e   :  { %787 = vmatmul.mubr.bf16.vlgmr.msra.gmra.mrb[4].mxu0 %v5503_v58  ;;  %4678 = vmatpush3.bf16.msra.mxu1 %v5507_v61 }
  0x7f   :  { %4679 = vmatprep.subr.bf16.mxu1 %v5510_v63  ;;  %794 = vmatprep.mubr.bf16.mxu0 %v5513_v2 }
  0x80   :  { %843 = vmatprep.mubr.bf16.mxu1 %v5524_v9 }
  0x82   :  { %4680 = vmatpush3.bf16.msra.mxu1 %v5512_v1 }
  0x83   :  { %4681 = vmatprep.subr.bf16.mxu1 %v5516_v3 }
  0x86   :  { %795 = vmatmul.mubr.bf16.gmra.mrb[8].mxu0 %v5515_v4  ;;  %4682 = vmatpush3.bf16.msra.mxu1 %v5517_v5 }
  0x87   :  { %802 = vmatprep.mubr.bf16.mxu0 %v5520_v7  ;;  %4683 = vmatprep.subr.bf16.mxu1 %v5518_v6 }
  0x8a   :  { %4684 = vmatpush3.bf16.msra.mxu1 %v5519_v8 }
  0x8d   :  { %844 = vmatmul.mubr.bf16.vlgmr.msra.gmra.mrb[12].mxu1 %v5522_v10 }
  0x8e   :  { %803 = vmatmul.mubr.bf16.gmra.mrb[12].mxu0 %v5525_v11  ;;  %851 = vmatprep.mubr.bf16.mxu1 %v5526_v12 }
  0x95   :  { %852 = vmatmul.mubr.bf16.gmra.mrb[16].mxu1 %v5528_v13 }
  0x96   :  { %859 = vmatprep.mubr.bf16.mxu1 %v5529_v14 }
  0x9d   :  { %860 = vmatmul.mubr.bf16.gmra.mrb[20].mxu1 %v5531_v15 }
 0x131   :  { %v5898_v17 = vpop.f32.mrb[0].mxu0 }
 0x132   :  { %v187_v18 = vpop.f32.mrb[1].mxu0 }
 0x133   :  { %v188_v19 = vadd.f32 %v5896_v16, %v187_v18 }
 0x135   :  { %v5901_v20 = vmul.f32 0.25, %v188_v19 }
 0x137   :  { %4870 = vmatprep.mubr.msk.f32.mxu0 %vm886_vm1, %v5901_v20 }
 0x140   :  { %v4617_v21 = vpop.f32.mrb[0].mxu1 }
 0x141   :  { %v4618_v22 = vpop.f32.mrb[1].mxu1 }
 0x142   :  { %v4619_v23 = vadd.f32 %v4618_v22, %v4617_v21  ;;  %v4620_v24 = vpop.f32.mrb[2].mxu1 }
 0x143   :  { %v4621_v25 = vpop.f32.mrb[3].mxu1 }
 0x144   :  { %v4622_v26 = vadd.f32 %v4621_v25, %v4620_v24  ;;  %v732_v38 = vadd.f32 %v4619_v23, %v4423_v31  ;;  %v193_v24 = vadd.f32 %v5898_v17, %v5896_v16 }
 0x146   :  { %v735_v43 = vadd.f32 %v4622_v26, %v4423_v31 }
 0x148   :  { %v4623_v27 = vpop.f32.mrb[4].mxu1 }
 0x149   :  { %v4624_v28 = vpop.f32.mrb[5].mxu1 }
 0x14a   :  { %v4625_v29 = vadd.f32 %v4624_v28, %v4623_v27  ;;  %v4626_v30 = vpop.f32.mrb[6].mxu1 }
 0x14b   :  { %v4627_v32 = vpop.f32.mrb[7].mxu1 }
 0x14c   :  { %v740_v33 = vadd.f32 %v4625_v29, %v4423_v31  ;;  %v4628_v34 = vadd.f32 %v4627_v32, %v4626_v30  ;;  %v5926_v29 = vmul.f32 0.25, %v193_v24 }
 0x14e   :  { %v743_v36 = vadd.f32 %v4628_v34, %v4423_v31 }
 0x150   :  { %v4629_v42 = vpop.f32.mrb[8].mxu1 }
 0x151   :  { %v4651_v35 = vpop.f32.mrb[4].mxu0  ;;  %v4630_v46 = vpop.f32.mrb[9].mxu1 }
 0x152   :  { %v4652_v37 = vpop.f32.mrb[5].mxu0  ;;  %v4631_v47 = vadd.f32 %v4630_v46, %v4629_v42  ;;  %v4632_v48 = vpop.f32.mrb[10].mxu1 }
 0x153   :  { %v4653_v39 = vadd.f32 %v4652_v37, %v4651_v35  ;;  %v4654_v40 = vpop.f32.mrb[6].mxu0  ;;  %v4633_v50 = vpop.f32.mrb[11].mxu1 }
 0x154   :  { %v4655_v41 = vpop.f32.mrb[7].mxu0  ;;  %v748_v51 = vadd.f32 %v4631_v47, %v4423_v31  ;;  %v4634_v52 = vadd.f32 %v4633_v50, %v4632_v48 }
 0x155   :  { %v789_v44 = vadd.f32 %v4653_v39, %v732_v38  ;;  %v4656_v45 = vadd.f32 %v4655_v41, %v4654_v40  ;;  %v882_v40 = vlaneseq }
 0x156   :  { %v751_v54 = vadd.f32 %v4634_v52, %v4423_v31 }
 0x157   :  { %v792_v49 = vadd.f32 %v4656_v45, %v735_v43  ;;  %v5938_v41 = vshrl.u32 %v882_v40, 7  ;;  %v5944_v43 = vld [vmem:[%s6428_s2] sm:$0x7]  ;;  %s5759_s2 = smov 96   ;;  %v872_v40 = vld [vmem:[%s6435_s9 + $0x18] sm:$0xff] }
 0x159   :  { %v4657_v53 = vpop.f32.mrb[8].mxu0  ;;  %v884_v42 = vsub.s32 0, %v5938_v41 }
 0x15a   :  { %v4658_v55 = vpop.f32.mrb[9].mxu0 }
 0x15b   :  { %v4659_v56 = vadd.f32 %v4658_v55, %v4657_v53  ;;  %v4660_v57 = vpop.f32.mrb[10].mxu0 }
 0x15c   :  { %v4661_v58 = vpop.f32.mrb[11].mxu0 }
 0x15d   :  { %v797_v59 = vadd.f32 %v4659_v56, %v740_v33  ;;  %v4662_v60 = vadd.f32 %v4661_v58, %v4660_v57 }
 0x15f   :  { %v800_v61 = vadd.f32 %v4662_v60, %v743_v36 }
 0x160   :  { %v4685_v63 = vpop.f32.mrb[12].mxu1 }
 0x161   :  { %v4663_v62 = vpop.f32.mrb[12].mxu0  ;;  %v4686_v1 = vpop.f32.mrb[13].mxu1 }
 0x162   :  { %v4664_v0 = vpop.f32.mrb[13].mxu0  ;;  %v4687_v3 = vadd.f32 %v4686_v1, %v4685_v63  ;;  %v4688_v5 = vpop.f32.mrb[14].mxu1 }
 0x163   :  { %v4665_v2 = vadd.f32 %v4664_v0, %v4663_v62  ;;  %v4666_v4 = vpop.f32.mrb[14].mxu0  ;;  %v4689_v7 = vpop.f32.mrb[15].mxu1 }
 0x164   :  { %v4667_v6 = vpop.f32.mrb[15].mxu0  ;;  %v846_v9 = vadd.f32 %v4687_v3, %v789_v44  ;;  %v4690_v11 = vadd.f32 %v4689_v7, %v4688_v5  ;;  %v5947_v44 = vrot.slane %v5944_v43, %v884_v42 }
 0x165   :  { %v805_v8 = vadd.f32 %v4665_v2, %v748_v51  ;;  %v4668_v10 = vadd.f32 %v4667_v6, %v4666_v4 }
 0x166   :  { %v849_v13 = vadd.f32 %v4690_v11, %v792_v49 }
 0x167   :  { %v808_v12 = vadd.f32 %v4668_v10, %v751_v54 }
 0x168   :  { %v4691_v15 = vpop.f32.mrb[16].mxu1  ;;  %v5914_v18 = vpack.i.bf16 %v849_v13, %v846_v9  ;;  %v5134_v19 = vpack.c.bf16 %v849_v13, %v846_v9 }
 0x169   :  { %v4692_v21 = vpop.f32.mrb[17].mxu1 }
 0x16a   :  { %v4693_v22 = vadd.f32 %v4692_v21, %v4691_v15  ;;  %v4694_v23 = vpop.f32.mrb[18].mxu1  ;;  %5351 = vrot.lane.b32.xlu1 %v5914_v18, %s5758_s8  ;;  %5136 = vmatprep.subr.msk.bf16.mxu0 %vm5910_vm2, %v5134_v19 }
 0x16b   :  { %v4695_v25 = vpop.f32.mrb[19].mxu1  ;;  %5139 = vmatpush3.bf16.xpose.msk.msra.mxu0 %vm5910_vm2, %v5134_v19 }
 0x16c   :  { %v854_v26 = vadd.f32 %v4693_v22, %v797_v59  ;;  %v4696_v27 = vadd.f32 %v4695_v25, %v4694_v23 }
 0x16e   :  { %v857_v28 = vadd.f32 %v4696_v27, %v800_v61  ;;  %1084 = vrot.lane.b32.xlu1 %v5901_v20, %s5758_s8 }
 0x170   :  { %v4697_v30 = vpop.f32.mrb[20].mxu1  ;;  %v5928_v31 = vpack.c.bf16 %v857_v28, %v854_v26  ;;  %v5930_v32 = vpack.i.bf16 %v857_v28, %v854_v26 }
 0x171   :  { %v4698_v33 = vpop.f32.mrb[21].mxu1 }
 0x172   :  { %v4699_v34 = vadd.f32 %v4698_v33, %v4697_v30  ;;  %v4700_v16 = vpop.f32.mrb[22].mxu1  ;;  %4871 = vmatmul.mubr.msk.f32.vlgmr.msra.gmra.mrb[2].mxu0 %vm886_vm1, %v5926_v29 }
 0x173   :  { %v4701_v17 = vpop.f32.mrb[23].mxu1 }
 0x174   :  { %v862_v35 = vadd.f32 %v4699_v34, %v805_v8  ;;  %v4702_v36 = vadd.f32 %v4701_v17, %v4700_v16 }
 0x176   :  { %v865_v37 = vadd.f32 %v4702_v36, %v808_v12 }
 0x178   :  { %v5934_v38 = vpack.c.bf16 %v865_v37, %v862_v35  ;;  %v5936_v39 = vpack.i.bf16 %v865_v37, %v862_v35  ;;  %v871_v37 = vld [vmem:[%s6435_s9 + $0x10] sm:$0xff] }
 0x179   :  { %v6003_v42 = vpack.c.bf16 %v872_v40, %v871_v37 }
 0x17b   :  { %5155 = vmatprep.subr.bf16.mxu1 %v6003_v42 }
 0x17c   :  { %5157 = vmatpush3.bf16.msra.mxu1 %v6003_v42 }
 0x1dc   :  { %v5352_v54 = vpop.permute.xlu1 %5351 }
 0x1dd   :  { %v5354_v58 = vunpack.i.h.bf16 %v5352_v54  ;;  %v5353_v60 = vunpack.i.l.bf16 %v5352_v54 }
 0x1df   :  { %v5144_v0 = vpack.c.bf16 %v5354_v58, %v5353_v60 }
 0x1e0   :  { %v5961_v5 = vpop.permute.xlu1 %1084 }
 0x245   :  { %v4872_v45 = vpop.f32.mrb[2].mxu0 }
 0x246   :  { %v965_v46 = vpop.f32.mrb[3].mxu0  ;;  %v971_v48 = vadd.f32 %v4872_v45, %v5947_v44 }
 0x247   :  { %v966_v47 = vadd.f32 %v965_v46, %v5947_v44 }
 0x248   :  { %v978_v50 = vsel %vm977_vm3, %v971_v48, -inf }
 0x249   :  { %v974_v49 = vsel %vm886_vm1, %v966_v47, -inf }
 0x24a   :  { %975 = vmax.xlane.f32.xlu0 %v974_v49 }
 0x24e   :  { %979 = vmax.xlane.f32.xlu0 %v978_v50 }
 0x264   :  { %5346 = vrot.lane.b32.xlu0 %v5914_v18, %s5756_s5 }
 0x2d7   :  { %v976_v51 = vpop.xlane.xlu0 %975 }
 0x2d8   :  { %v981_v52 = vsub.f32 %v966_v47, %v976_v51 }
 0x2da   :  { %v983_v56 = vmul.f32 1.442695, %v981_v52 }
 0x2db   :  { %v980_v53 = vpop.xlane.xlu0 %979 }
 0x2dc   :  { %v982_v55 = vsub.f32 %v971_v48, %v980_v53 }
 0x2de   :  { %v985_v57 = vmul.f32 1.442695, %v982_v55 }
 0x2df   :  { %v5347_v59 = vpop.permute.xlu0 %5346 }
 0x2e0   :  { %5532 = vpow2.f32 %v985_v57  ;;  %v5349_v61 = vunpack.i.h.bf16 %v5347_v59  ;;  %v5348_v62 = vunpack.i.l.bf16 %v5347_v59 }
 0x2e1   :  { %5534 = vpow2.f32 %v983_v56 }
 0x2e2   :  { %v5140_v63 = vpack.c.bf16 %v5349_v61, %v5348_v62 }
 0x2e4   :  { %5141 = vmatprep.subr.bf16.mxu0 %v5140_v63 }
 0x2e5   :  { %5143 = vmatpush3.bf16.msra.mxu0 %v5140_v63 }
 0x2e6   :  { %5146 = vmatprep.subr.msk.bf16.mxu0 %vm5910_vm2, %v5144_v0 }
 0x2ea   :  { %v5533_v1 = vpop.eup %5532 }
 0x2eb   :  { %v990_v2 = vsel %vm977_vm3, %v5533_v1, 0.0  ;;  %v5535_v3 = vpop.eup %5534 }
 0x2ec   :  { %991 = vadd.xlane.f32.xlu1 %v990_v2  ;;  %v987_v4 = vsel %vm886_vm1, %v5535_v3, 0.0 }
 0x2f0   :  { %988 = vadd.xlane.f32.xlu1 %v987_v4  ;;  %v870_v4 = vld [vmem:[%s6435_s9 + $0x8] sm:$0xff] }
 0x301   :  { %1086 = vrot.lane.b32.xlu1 %v5926_v29, %s5758_s8 }
 0x379   :  { %v992_v6 = vpop.xlane.xlu1 %991 }
 0x37a   :  { %5536 = vrcp.f32 %v992_v6 }
 0x37d   :  { %v989_v7 = vpop.xlane.xlu1 %988 }
 0x37e   :  { %5538 = vrcp.f32 %v989_v7 }
 0x381   :  { %v5969_v12 = vpop.permute.xlu1 %1086 }
 0x384   :  { %v5537_v8 = vpop.eup %5536 }
 0x385   :  { %v996_v11 = vmul.f32 %v5537_v8, %v5533_v1 }
 0x388   :  { %v5539_v9 = vpop.eup %5538 }
 0x389   :  { %v995_v10 = vmul.f32 %v5539_v9, %v5535_v3  ;;  %v869_v3 = vld [vmem:[%s6435_s9] sm:$0xff] }
 0x38a   :  { %v6051_v6 = vpack.c.bf16 %v870_v4, %v869_v3 }
 0x38b   :  { %4877 = vmatprep.mubr.msk.f32.mxu0 %vm886_vm1, %v995_v10 }
 0x38c   :  { %4878 = vmatmul.mubr.msk.f32.vlgmr.msra.gmra.mrb[16].mxu0 %vm886_vm1, %v996_v11  ;;  %5159 = vmatprep.subr.bf16.mxu1 %v6051_v6 }
 0x38d   :  { %5149 = vmatpush3.bf16.xpose.msk.msra.mxu0 %vm5910_vm2, %v5144_v0  ;;  %4884 = vmatprep.mubr.msk.f32.mxu0 %vm886_vm1, %v5961_v5 }
 0x394   :  { %4885 = vmatmul.mubr.msk.f32.vlgmr.msra.gmra.mrb[18].mxu0 %vm886_vm1, %v5969_v12 }
 0x45f   :  { %v5973_v13 = vpop.f32.mrb[16].mxu0 }
 0x460   :  { %v5975_v15 = vpop.f32.mrb[17].mxu0 }
 0x467   :  { %v4886_v19 = vpop.f32.mrb[18].mxu0 }
 0x468   :  { %v1172_v21 = vadd.f32 %v4886_v19, %v5947_v44  ;;  %v1166_v22 = vpop.f32.mrb[19].mxu0 }
 0x469   :  { %v1167_v23 = vadd.f32 %v1166_v22, %v5947_v44 }
 0x46a   :  { %v1178_v24 = vsel %vm977_vm3, %v1172_v21, -inf }
 0x46b   :  { %1179 = vmax.xlane.f32.xlu1 %v1178_v24  ;;  %v1175_v25 = vsel %vm886_vm1, %v1167_v23, -inf }
 0x46c   :  { %1176 = vmax.xlane.f32.xlu0 %v1175_v25 }
 0x47c   :  { %5361 = vrot.lane.b32.xlu1 %v5914_v18, %s5759_s2 }
 0x480   :  { %1446 = vrot.lane.b32.xlu1 %v5901_v20, %s5759_s2 }
 0x484   :  { %1448 = vrot.lane.b32.xlu1 %v5926_v29, %s5759_s2 }
 0x488   :  { %1729 = vrot.lane.b32.xlu1 %v5901_v20, %s5760_s23 }
 0x4f8   :  { %v1180_v26 = vpop.xlane.xlu1 %1179 }
 0x4f9   :  { %v1182_v27 = vsub.f32 %v1172_v21, %v1180_v26  ;;  %v1177_v28 = vpop.xlane.xlu0 %1176 }
 0x4fa   :  { %v1181_v30 = vsub.f32 %v1167_v23, %v1177_v28 }
 0x4fb   :  { %v1185_v33 = vmul.f32 1.442695, %v1182_v27 }
 0x4fc   :  { %v1183_v34 = vmul.f32 1.442695, %v1181_v30  ;;  %v5362_v47 = vpop.permute.xlu1 %5361 }
 0x4fd   :  { %5540 = vpow2.f32 %v1185_v33  ;;  %v5364_v49 = vunpack.i.h.bf16 %v5362_v47  ;;  %v5363_v50 = vunpack.i.l.bf16 %v5362_v47 }
 0x4fe   :  { %5542 = vpow2.f32 %v1183_v34 }
 0x4ff   :  { %v5162_v54 = vpack.c.bf16 %v5364_v49, %v5363_v50 }
 0x500   :  { %v6009_v60 = vpop.permute.xlu1 %1446 }
 0x504   :  { %v6017_v0 = vpop.permute.xlu1 %1448 }
 0x507   :  { %v5541_v16 = vpop.eup %5540 }
 0x508   :  { %v1190_v17 = vsel %vm977_vm3, %v5541_v16, 0.0  ;;  %v5543_v35 = vpop.eup %5542  ;;  %v6021_v1 = vpop.permute.xlu1 %1729 }
 0x509   :  { %1191 = vadd.xlane.f32.xlu0 %v1190_v17  ;;  %v1187_v36 = vsel %vm886_vm1, %v5543_v35, 0.0 }
 0x50d   :  { %1188 = vadd.xlane.f32.xlu0 %v1187_v36 }
 0x523   :  { %5356 = vrot.lane.b32.xlu0 %v5914_v18, %s5761_s24 }
 0x527   :  { %5366 = vrot.lane.b32.xlu0 %v5914_v18, %s5760_s23 }
 0x52b   :  { %1731 = vrot.lane.b32.xlu0 %v5926_v29, %s5760_s23 }
 0x596   :  { %v1192_v45 = vpop.xlane.xlu0 %1191 }
 0x597   :  { %5544 = vrcp.f32 %v1192_v45 }
 0x59a   :  { %v1189_v46 = vpop.xlane.xlu0 %1188 }
 0x59b   :  { %5546 = vrcp.f32 %v1189_v46 }
 0x59e   :  { %v5357_v48 = vpop.permute.xlu0 %5356 }
 0x59f   :  { %v5359_v51 = vunpack.i.h.bf16 %v5357_v48  ;;  %v5358_v52 = vunpack.i.l.bf16 %v5357_v48 }
 0x5a1   :  { %v5150_v53 = vpack.c.bf16 %v5359_v51, %v5358_v52  ;;  %v5545_v55 = vpop.eup %5544 }
 0x5a2   :  { %v5367_v57 = vpop.permute.xlu0 %5366  ;;  %v1196_v59 = vmul.f32 %v5545_v55, %v5541_v16  ;;  %v874_v55 = vld [vmem:[%s6435_s9 + $0x28] sm:$0xff] }
 0x5a3   :  { %5151 = vmatprep.subr.bf16.mxu0 %v5150_v53  ;;  %v5369_v61 = vunpack.i.h.bf16 %v5367_v57  ;;  %v5368_v62 = vunpack.i.l.bf16 %v5367_v57 }
 0x5a4   :  { %5153 = vmatpush3.bf16.msra.mxu0 %v5150_v53 }
 0x5a5   :  { %v5547_v56 = vpop.eup %5546  ;;  %5164 = vmatprep.subr.msk.bf16.mxu0 %vm5910_vm2, %v5162_v54  ;;  %v5176_v63 = vpack.c.bf16 %v5369_v61, %v5368_v62 }
 0x5a6   :  { %v1195_v58 = vmul.f32 %v5547_v56, %v5543_v35  ;;  %v6032_v2 = vpop.permute.xlu0 %1731  ;;  %v2053_v56 = vsub.s32 1, %v5938_v41 }
 0x5a8   :  { %4891 = vmatprep.mubr.msk.f32.mxu0 %vm886_vm1, %v1195_v58  ;;  %v6094_v57 = vrot.slane %v5944_v43, %v2053_v56 }
 0x5a9   :  { %4892 = vmatmul.mubr.msk.f32.vlgmr.msra.gmra.mrb[20].mxu0 %vm886_vm1, %v1196_v59 }
 0x5aa   :  { %4912 = vmatprep.mubr.msk.f32.mxu0 %vm886_vm1, %v6009_v60 }
 0x5ad   :  { %5167 = vmatpush3.bf16.xpose.msk.msra.mxu0 %vm5910_vm2, %v5162_v54  ;;  %v873_v54 = vld [vmem:[%s6435_s9 + $0x20] sm:$0xff] }
 0x5ae   :  { %5178 = vmatprep.subr.msk.bf16.mxu0 %vm5910_vm2, %v5176_v63 }
 0x5b4   :  { %4913 = vmatmul.mubr.msk.f32.vlgmr.msra.gmra.mrb[22].mxu0 %vm886_vm1, %v6017_v0 }
 0x5b5   :  { %5181 = vmatpush3.bf16.xpose.msk.msra.mxu0 %vm5910_vm2, %v5176_v63  ;;  %4933 = vmatprep.mubr.msk.f32.mxu0 %vm886_vm1, %v6021_v1 }
 0x5b6   :  { %5192 = vmatprep.subr.msk.bf16.mxu0 %vm5910_vm2, %v5928_v31 }
 0x5bc   :  { %4934 = vmatmul.mubr.msk.f32.vlgmr.msra.gmra.mrb[24].mxu0 %vm886_vm1, %v6032_v2 }
 0x5bd   :  { %5195 = vmatpush3.bf16.xpose.msk.msra.mxu0 %vm5910_vm2, %v5928_v31  ;;  %4954 = vmatprep.mubr.msk.f32.mxu0 %vm886_vm1, %v5901_v20 }
 0x5c4   :  { %4955 = vmatmul.mubr.msk.f32.vlgmr.msra.gmra.mrb[26].mxu0 %vm886_vm1, %v5926_v29 }
 0x5c5   :  { %4968 = vmatprep.mubr.msk.f32.mxu0 %vm886_vm1, %v5961_v5 }
 0x67c   :  { %v4893_v31 = vpop.f32.mrb[20].mxu0 }
 0x67d   :  { %v1275_v7 = vpop.f32.mrb[21].mxu0 }
 0x67e   :  { %4898 = vmatprep.mubr.msk.f32.mxu1 %vm886_vm1, %v1275_v7 }
 0x67f   :  { %4899 = vmatmul.mubr.msk.f32.vlgmr.msra.gmra.mrb[24].mxu1 %vm886_vm1, %v4893_v31 }
 0x680   :  { %4905 = vmatprep.mubr.msk.f32.mxu1 %vm886_vm1, %v5975_v15  ;;  %5161 = vmatpush3.bf16.msra.mxu1 %v6051_v6 }
 0x687   :  { %4906 = vmatmul.mubr.msk.f32.vlgmr.msra.gmra.mrb[24].mxu1 %vm886_vm1, %v5973_v13  ;;  %v4914_v8 = vpop.f32.mrb[22].mxu0 }
 0x688   :  { %v1534_v9 = vadd.f32 %v4914_v8, %v5947_v44  ;;  %v1528_v10 = vpop.f32.mrb[23].mxu0 }
 0x689   :  { %v1529_v11 = vadd.f32 %v1528_v10, %v5947_v44 }
 0x68a   :  { %v1540_v19 = vsel %vm977_vm3, %v1534_v9, -inf }
 0x68b   :  { %1541 = vmax.xlane.f32.xlu0 %v1540_v19  ;;  %v1537_v21 = vsel %vm886_vm1, %v1529_v11, -inf }
 0x68c   :  { %1538 = vmax.xlane.f32.xlu1 %v1537_v21 }
 0x68f   :  { %v4935_v22 = vpop.f32.mrb[24].mxu0 }
 0x690   :  { %v1811_v23 = vpop.f32.mrb[25].mxu0  ;;  %v1817_v51 = vadd.f32 %v4935_v22, %v5947_v44 }
 0x691   :  { %v1812_v13 = vadd.f32 %v1811_v23, %v5947_v44  ;;  %v6089_v44 = vpack.c.bf16 %v874_v55, %v873_v54 }
 0x692   :  { %v1823_v53 = vsel %vm977_vm3, %v1817_v51, -inf }
 0x693   :  { %v1820_v25 = vsel %vm886_vm1, %v1812_v13, -inf }
 0x697   :  { %v6065_v15 = vpop.f32.mrb[26].mxu0 }
 0x698   :  { %v2127_v24 = vpop.f32.mrb[27].mxu0 }
 0x699   :  { %v2128_v58 = vadd.f32 %v2127_v24, %v6094_v57 }
 0x69d   :  { %5371 = vrot.lane.b32.xlu1 %v5914_v18, %s5762_s14 }
 0x6c1   :  { %1821 = vmax.xlane.f32.xlu1 %v1820_v25 }
 0x718   :  { %v1542_v26 = vpop.xlane.xlu0 %1541 }
 0x719   :  { %v1544_v27 = vsub.f32 %v1534_v9, %v1542_v26  ;;  %v1539_v28 = vpop.xlane.xlu1 %1538 }
 0x71a   :  { %v1543_v30 = vsub.f32 %v1529_v11, %v1539_v28 }
 0x71b   :  { %v1547_v33 = vmul.f32 1.442695, %v1544_v27  ;;  %v2133_v27 = vadd.f32 %v6065_v15, %v6094_v57 }
 0x71c   :  { %v1545_v34 = vmul.f32 1.442695, %v1543_v30 }
 0x71d   :  { %v5372_v16 = vpop.permute.xlu1 %5371  ;;  %v2139_v28 = vsel %vm977_vm3, %v2133_v27, -inf }
 0x71e   :  { %5548 = vpow2.f32 %v1545_v34  ;;  %v5374_v17 = vunpack.i.h.bf16 %v5372_v16  ;;  %v5373_v35 = vunpack.i.l.bf16 %v5372_v16 }
 0x71f   :  { %5550 = vpow2.f32 %v1547_v33 }
 0x720   :  { %v5168_v36 = vpack.c.bf16 %v5374_v17, %v5373_v35 }
 0x722   :  { %5169 = vmatprep.subr.bf16.mxu1 %v5168_v36 }
 0x723   :  { %5171 = vmatpush3.bf16.msra.mxu1 %v5168_v36 }
 0x724   :  { %5173 = vmatprep.subr.bf16.mxu1 %v6089_v44 }
 0x728   :  { %v5549_v37 = vpop.eup %5548 }
 0x729   :  { %v1549_v40 = vsel %vm886_vm1, %v5549_v37, 0.0  ;;  %v5551_v45 = vpop.eup %5550 }
 0x72a   :  { %1550 = vadd.xlane.f32.xlu0 %v1549_v40  ;;  %v1552_v46 = vsel %vm977_vm3, %v5551_v45, 0.0 }
 0x72e   :  { %1553 = vadd.xlane.f32.xlu0 %v1552_v46 }
 0x744   :  { %5376 = vrot.lane.b32.xlu0 %v5930_v32, %s5758_s8 }
 0x74e   :  { %v1822_v47 = vpop.xlane.xlu1 %1821 }
 0x74f   :  { %v1826_v48 = vsub.f32 %v1812_v13, %v1822_v47 }
 0x751   :  { %v1828_v49 = vmul.f32 1.442695, %v1826_v48 }
 0x753   :  { %5552 = vpow2.f32 %v1828_v49 }
 0x75d   :  { %v6075_v50 = vpop.eup %5552 }
 0x75e   :  { %v1832_v52 = vsel %vm886_vm1, %v6075_v50, 0.0 }
 0x75f   :  { %1833 = vadd.xlane.f32.xlu1 %v1832_v52 }
 0x763   :  { %1824 = vmax.xlane.f32.xlu0 %v1823_v53 }
 0x770   :  { %5381 = vrot.lane.b32.xlu1 %v5914_v18, %s5763_s16  ;;  %v2136_v18 = vsel %vm886_vm1, %v2128_v58, -inf }
 0x794   :  { %2137 = vmax.xlane.f32.xlu1 %v2136_v18 }
 0x7b7   :  { %v1551_v59 = vpop.xlane.xlu0 %1550 }
 0x7b8   :  { %5554 = vrcp.f32 %v1551_v59 }
 0x7bb   :  { %v1554_v61 = vpop.xlane.xlu0 %1553 }
 0x7bc   :  { %5556 = vrcp.f32 %v1554_v61 }
 0x7bf   :  { %v5377_v62 = vpop.permute.xlu0 %5376 }
 0x7c0   :  { %v5379_v63 = vunpack.i.h.bf16 %v5377_v62  ;;  %v5378_v3 = vunpack.i.l.bf16 %v5377_v62 }
 0x7c2   :  { %v5555_v4 = vpop.eup %5554  ;;  %v5200_v31 = vpack.c.bf16 %v5379_v63, %v5378_v3  ;;  %v875_v63 = vld [vmem:[%s6435_s9 + $0x30] sm:$0xff]  ;;  %v876_v3 = vld [vmem:[%s6435_s9 + $0x38] sm:$0xff] }
 0x7c3   :  { %v1557_v7 = vmul.f32 %v5555_v4, %v5549_v37  ;;  %v6143_v4 = vpack.c.bf16 %v876_v3, %v875_v63 }
 0x7c4   :  { %5202 = vmatprep.subr.msk.bf16.mxu0 %vm5910_vm2, %v5200_v31 }
 0x7c5   :  { %4919 = vmatprep.mubr.msk.f32.mxu1 %vm886_vm1, %v1557_v7  ;;  %5205 = vmatpush3.bf16.xpose.msk.msra.mxu0 %vm5910_vm2, %v5200_v31 }
 0x7c6   :  { %v5557_v8 = vpop.eup %5556 }
 0x7c7   :  { %v1558_v9 = vmul.f32 %v5557_v8, %v5551_v45 }
 0x7c9   :  { %4920 = vmatmul.mubr.msk.f32.vlgmr.msra.gmra.mrb[26].mxu1 %vm886_vm1, %v1558_v9 }
 0x7ca   :  { %5175 = vmatpush3.bf16.msra.mxu1 %v6089_v44 }
 0x7cc   :  { %4969 = vmatmul.mubr.msk.f32.vlgmr.msra.gmra.mrb[28].mxu0 %vm886_vm1, %v5969_v12 }
 0x7cd   :  { %4996 = vmatprep.mubr.msk.f32.mxu0 %vm886_vm1, %v6009_v60 }
 0x7ec   :  { %v1834_v10 = vpop.xlane.xlu1 %1833 }
 0x7f0   :  { %v1825_v11 = vpop.xlane.xlu0 %1824  ;;  %v5382_v19 = vpop.permute.xlu1 %5381 }
 0x7f1   :  { %v1827_v21 = vsub.f32 %v1817_v51, %v1825_v11  ;;  %v5384_v22 = vunpack.i.h.bf16 %v5382_v19  ;;  %v5383_v23 = vunpack.i.l.bf16 %v5382_v19 }
 0x7f3   :  { %v1830_v24 = vmul.f32 1.442695, %v1827_v21  ;;  %v5182_v13 = vpack.c.bf16 %v5384_v22, %v5383_v23 }
 0x7f5   :  { %5558 = vpow2.f32 %v1830_v24  ;;  %5183 = vmatprep.subr.bf16.mxu1 %v5182_v13 }
 0x7f6   :  { %5560 = vrcp.f32 %v1834_v10 }
 0x7ff   :  { %v5559_v25 = vpop.eup %5558 }
 0x800   :  { %v1835_v26 = vsel %vm977_vm3, %v5559_v25, 0.0  ;;  %v5561_v15 = vpop.eup %5560 }
 0x801   :  { %1836 = vadd.xlane.f32.xlu0 %v1835_v26  ;;  %v1840_v47 = vmul.f32 %v5561_v15, %v6075_v50 }
 0x817   :  { %5386 = vrot.lane.b32.xlu0 %v5930_v32, %s5759_s2 }
 0x821   :  { %v2138_v33 = vpop.xlane.xlu1 %2137 }
 0x822   :  { %v2142_v34 = vsub.f32 %v2128_v58, %v2138_v33 }
 0x824   :  { %v2144_v37 = vmul.f32 1.442695, %v2142_v34 }
 0x836   :  { %2140 = vmax.xlane.f32.xlu0 %v2139_v28 }
 0x88e   :  { %v1837_v30 = vpop.xlane.xlu0 %1836 }
 0x88f   :  { %5562 = vrcp.f32 %v1837_v30 }
 0x890   :  { %5564 = vpow2.f32 %v2144_v37 }
 0x892   :  { %v5387_v16 = vpop.permute.xlu0 %5386 }
 0x893   :  { %v5389_v17 = vunpack.i.h.bf16 %v5387_v16  ;;  %v5388_v35 = vunpack.i.l.bf16 %v5387_v16 }
 0x895   :  { %v5218_v36 = vpack.c.bf16 %v5389_v17, %v5388_v35 }
 0x897   :  { %5220 = vmatprep.subr.msk.bf16.mxu0 %vm5910_vm2, %v5218_v36 }
 0x898   :  { %5223 = vmatpush3.bf16.xpose.msk.msra.mxu0 %vm5910_vm2, %v5218_v36 }
 0x899   :  { %v5563_v46 = vpop.eup %5562 }
 0x89a   :  { %v1841_v52 = vmul.f32 %v5563_v46, %v5559_v25  ;;  %v5565_v55 = vpop.eup %5564 }
 0x89b   :  { %v2148_v56 = vsel %vm886_vm1, %v5565_v55, 0.0 }
 0x89c   :  { %v4921_v40 = vpop.f32.mrb[26].mxu1 }
 0x89d   :  { %v1637_v45 = vpop.f32.mrb[27].mxu1 }
 0x89e   :  { %4926 = vmatprep.mubr.msk.f32.mxu1 %vm886_vm1, %v1637_v45 }
 0x89f   :  { %4927 = vmatmul.mubr.msk.f32.vlgmr.msra.gmra.mrb[24].mxu1 %vm886_vm1, %v4921_v40  ;;  %v4970_v48 = vpop.f32.mrb[28].mxu0  ;;  %4997 = vmatmul.mubr.msk.f32.vlgmr.msra.gmra.mrb[30].mxu0 %vm886_vm1, %v6017_v0 }
 0x8a0   :  { %5185 = vmatpush3.bf16.msra.mxu1 %v5182_v13  ;;  %v2325_v49 = vadd.f32 %v4970_v48, %v6094_v57  ;;  %4940 = vmatprep.mubr.msk.f32.mxu1 %vm886_vm1, %v1840_v47  ;;  %v2319_v51 = vpop.f32.mrb[29].mxu0 }
 0x8a1   :  { %v2320_v53 = vadd.f32 %v2319_v51, %v6094_v57  ;;  %5017 = vmatprep.mubr.msk.f32.mxu0 %vm886_vm1, %v6021_v1  ;;  %5187 = vmatprep.subr.bf16.mxu1 %v6143_v4 }
 0x8a2   :  { %v2331_v50 = vsel %vm977_vm3, %v2325_v49, -inf }
 0x8a3   :  { %2332 = vmax.xlane.f32.xlu0 %v2331_v50  ;;  %4941 = vmatmul.mubr.msk.f32.vlgmr.msra.gmra.mrb[28].mxu1 %vm886_vm1, %v1841_v52  ;;  %v2328_v54 = vsel %vm886_vm1, %v2320_v53, -inf }
 0x8a4   :  { %2329 = vmax.xlane.f32.xlu1 %v2328_v54  ;;  %5189 = vmatpush3.bf16.msra.mxu1 %v6143_v4 }
 0x8a8   :  { %2149 = vadd.xlane.f32.xlu1 %v2148_v56 }
 0x8c3   :  { %v2141_v58 = vpop.xlane.xlu0 %2140 }
 0x8c4   :  { %v2143_v18 = vsub.f32 %v2133_v27, %v2141_v58 }
 0x8c6   :  { %v2146_v59 = vmul.f32 1.442695, %v2143_v18 }
 0x8c8   :  { %5566 = vpow2.f32 %v2146_v59 }
 0x8d2   :  { %v6133_v61 = vpop.eup %5566 }
 0x8d3   :  { %v2151_v62 = vsel %vm977_vm3, %v6133_v61, 0.0 }
 0x8d4   :  { %2152 = vadd.xlane.f32.xlu0 %v2151_v62 }
 0x930   :  { %v2333_v31 = vpop.xlane.xlu0 %2332 }
 0x931   :  { %v2335_v7 = vsub.f32 %v2325_v49, %v2333_v31  ;;  %v2330_v8 = vpop.xlane.xlu1 %2329 }
 0x932   :  { %v2334_v9 = vsub.f32 %v2320_v53, %v2330_v8 }
 0x933   :  { %v2338_v10 = vmul.f32 1.442695, %v2335_v7 }
 0x934   :  { %v2336_v11 = vmul.f32 1.442695, %v2334_v9 }
 0x935   :  { %5568 = vpow2.f32 %v2338_v10  ;;  %v2150_v24 = vpop.xlane.xlu1 %2149 }
 0x936   :  { %5570 = vpow2.f32 %v2336_v11 }
 0x937   :  { %5572 = vrcp.f32 %v2150_v24 }
 0x93f   :  { %v5569_v19 = vpop.eup %5568 }
 0x940   :  { %v5571_v21 = vpop.eup %5570  ;;  %v2343_v22 = vsel %vm977_vm3, %v5569_v19, 0.0 }
 0x941   :  { %2344 = vadd.xlane.f32.xlu0 %v2343_v22  ;;  %v2340_v23 = vsel %vm886_vm1, %v5571_v21, 0.0  ;;  %v5573_v27 = vpop.eup %5572 }
 0x942   :  { %2341 = vadd.xlane.f32.xlu1 %v2340_v23  ;;  %v2156_v16 = vmul.f32 %v5573_v27, %v5565_v55 }
 0x953   :  { %5391 = vrot.lane.b32.xlu1 %v5930_v32, %s5756_s5 }
 0x957   :  { %5396 = vrot.lane.b32.xlu0 %v5930_v32, %s5761_s24  ;;  %5401 = vrot.lane.b32.xlu1 %v5930_v32, %s5760_s23 }
 0x961   :  { %v2153_v35 = vpop.xlane.xlu0 %2152 }
 0x962   :  { %5574 = vrcp.f32 %v2153_v35 }
 0x96c   :  { %v5575_v51 = vpop.eup %5574 }
 0x96d   :  { %v2157_v56 = vmul.f32 %v5575_v51, %v6133_v61 }
 0x972   :  { %v4998_v13 = vpop.f32.mrb[30].mxu0 }
 0x973   :  { %v2679_v25 = vadd.f32 %v4998_v13, %v6094_v57  ;;  %v2673_v26 = vpop.f32.mrb[31].mxu0 }
 0x974   :  { %v2674_v30 = vadd.f32 %v2673_v26, %v6094_v57 }
 0x975   :  { %v2685_v28 = vsel %vm977_vm3, %v2679_v25, -inf }
 0x976   :  { %2686 = vmax.xlane.f32.xlu0 %v2685_v28  ;;  %v4942_v33 = vpop.f32.mrb[28].mxu1  ;;  %v2682_v17 = vsel %vm886_vm1, %v2674_v30, -inf }
 0x977   :  { %v1920_v34 = vpop.f32.mrb[29].mxu1 }
 0x978   :  { %4947 = vmatprep.mubr.msk.f32.mxu1 %vm886_vm1, %v1920_v34 }
 0x979   :  { %4948 = vmatmul.mubr.msk.f32.vlgmr.msra.gmra.mrb[24].mxu1 %vm886_vm1, %v4942_v33 }
 0x97a   :  { %4961 = vmatprep.mubr.msk.f32.mxu1 %vm886_vm1, %v2156_v16 }
 0x97b   :  { %2683 = vmax.xlane.f32.xlu1 %v2682_v17 }
 0x9ce   :  { %v2345_v36 = vpop.xlane.xlu0 %2344 }
 0x9cf   :  { %v2342_v37 = vpop.xlane.xlu1 %2341 }
 0x9d0   :  { %5576 = vrcp.f32 %v2342_v37 }
 0x9d1   :  { %5578 = vrcp.f32 %v2345_v36 }
 0x9d2   :  { %v5397_v15 = vpop.permute.xlu0 %5396 }
 0x9d3   :  { %v5392_v40 = vpop.permute.xlu1 %5391  ;;  %v5399_v45 = vunpack.i.h.bf16 %v5397_v15  ;;  %v5398_v46 = vunpack.i.l.bf16 %v5397_v15 }
 0x9d4   :  { %v5394_v47 = vunpack.i.h.bf16 %v5392_v40  ;;  %v5393_v48 = vunpack.i.l.bf16 %v5392_v40 }
 0x9d5   :  { %v5206_v53 = vpack.c.bf16 %v5399_v45, %v5398_v46 }
 0x9d6   :  { %v5196_v49 = vpack.c.bf16 %v5394_v47, %v5393_v48 }
 0x9d7   :  { %v5402_v52 = vpop.permute.xlu1 %5401 }
 0x9d8   :  { %v5404_v50 = vunpack.i.h.bf16 %v5402_v52  ;;  %v5403_v54 = vunpack.i.l.bf16 %v5402_v52  ;;  %5197 = vmatprep.subr.bf16.mxu1 %v5196_v49 }
 0x9d9   :  { %5199 = vmatpush3.bf16.msra.mxu1 %v5196_v49 }
 0x9da   :  { %v5577_v55 = vpop.eup %5576  ;;  %v5232_v58 = vpack.c.bf16 %v5404_v50, %v5403_v54  ;;  %5207 = vmatprep.subr.bf16.mxu1 %v5206_v53 }
 0x9db   :  { %v5579_v18 = vpop.eup %5578  ;;  %v2348_v59 = vmul.f32 %v5577_v55, %v5571_v21 }
 0x9dc   :  { %4962 = vmatmul.mubr.msk.f32.vlgmr.msra.gmra.mrb[30].mxu1 %vm886_vm1, %v2157_v56  ;;  %5234 = vmatprep.subr.msk.bf16.mxu0 %vm5910_vm2, %v5232_v58  ;;  %v2349_v62 = vmul.f32 %v5579_v18, %v5569_v19 }
 0x9dd   :  { %5209 = vmatpush3.bf16.msra.mxu1 %v5206_v53  ;;  %4975 = vmatprep.mubr.msk.f32.mxu1 %vm886_vm1, %v2348_v59 }
 0x9de   :  { %5237 = vmatpush3.bf16.xpose.msk.msra.mxu0 %vm5910_vm2, %v5232_v58  ;;  %5211 = vmatprep.subr.bf16.mxu1 %v6003_v42 }
 0x9df   :  { %5248 = vmatprep.subr.msk.bf16.mxu0 %vm5910_vm2, %v5934_v38 }
 0x9e0   :  { %4976 = vmatmul.mubr.msk.f32.vlgmr.msra.gmra.mrb[32].mxu1 %vm886_vm1, %v2349_v62  ;;  %v3180_v62 = vsub.s32 2, %v5938_v41 }
 0x9e1   :  { %5213 = vmatpush3.bf16.msra.mxu1 %v6003_v42 }
 0x9e2   :  { %5215 = vmatprep.subr.bf16.mxu1 %v6051_v6 }
 0x9e5   :  { %5018 = vmatmul.mubr.msk.f32.vlgmr.msra.gmra.mrb[32].mxu0 %vm886_vm1, %v6032_v2 }
 0x9e6   :  { %5251 = vmatpush3.bf16.xpose.msk.msra.mxu0 %vm5910_vm2, %v5934_v38  ;;  %5038 = vmatprep.mubr.msk.f32.mxu0 %vm886_vm1, %v5901_v20 }
 0x9ed   :  { %5039 = vmatmul.mubr.msk.f32.vlgmr.msra.gmra.mrb[34].mxu0 %vm886_vm1, %v5926_v29  ;;  %v6196_v29 = vld [vmem:[%s6436_s10] ss:$0 sm:$0xff] }
 0x9ee   :  { %5052 = vmatprep.mubr.msk.f32.mxu0 %vm886_vm1, %v5961_v5 }
 0xa03   :  { %v2687_v61 = vpop.xlane.xlu0 %2686 }
 0xa04   :  { %v2689_v63 = vsub.f32 %v2679_v25, %v2687_v61 }
 0xa06   :  { %v2692_v3 = vmul.f32 1.442695, %v2689_v63  ;;  %v6243_v63 = vrot.slane %v5944_v43, %v3180_v62 }
 0xa08   :  { %5580 = vpow2.f32 %v2692_v3  ;;  %v2684_v31 = vpop.xlane.xlu1 %2683 }
 0xa09   :  { %v2688_v7 = vsub.f32 %v2674_v30, %v2684_v31 }
 0xa0b   :  { %v2690_v8 = vmul.f32 1.442695, %v2688_v7 }
 0xa0d   :  { %5582 = vpow2.f32 %v2690_v8 }
 0xa12   :  { %v5581_v9 = vpop.eup %5580 }
 0xa13   :  { %v2697_v38 = vsel %vm977_vm3, %v5581_v9, 0.0 }
 0xa14   :  { %2698 = vadd.xlane.f32.xlu1 %v2697_v38 }
 0xa17   :  { %v5583_v10 = vpop.eup %5582 }
 0xa18   :  { %v2694_v20 = vsel %vm886_vm1, %v5583_v10, 0.0 }
 0xa19   :  { %2695 = vadd.xlane.f32.xlu0 %v2694_v20 }
 0xa25   :  { %5411 = vrot.lane.b32.xlu1 %v5936_v39, %s5758_s8  ;;  %s5730_s8 = scalar_lea.hbm %s6438_s12, 16 }
 0xa26   :  { %p5731_p4 = scmp.ne.s32.totalorder %s6438_s12, %s5730_s8  ;;  %p5734_p5 = scmp.lt.u32.totalorder %s5730_s8, %s6438_s12 }
 0xa28   :  { %p5736_p6 = pnand %p5734_p5, %p5731_p4 }
 0xa2f   :  { %5406 = vrot.lane.b32.xlu0 %v5930_v32, %s5762_s14 }
 0xa4c   :  { %v4949_v5 = vpop.f32.mrb[24].mxu1 }
 0xa4d   :  { %v6199_v11 = vadd.f32 %v4949_v5, %v6196_v29  ;;  %v2001_v19 = vpop.f32.mrb[25].mxu1 }
 0xa4e   :  { %v6202_v21 = vadd.f32 %v6196_v29, %v2001_v19 }
 0xa4f   :  { %2022 = vst.msk [vmem:[%s6437_s11 + $0x8] sm:$0x7] %vm2021_vm4, %v6199_v11 }
 0xa50   :  { %2020 = vst.msk [vmem:[%s6437_s11] sm:$0xff] %vm114_vm0, %v6202_v21 }
 0xaa1   :  { %v2699_v22 = vpop.xlane.xlu1 %2698 }
 0xaa5   :  { %v5412_v23 = vpop.permute.xlu1 %5411 }
 0xaa6   :  { %v5414_v24 = vunpack.i.h.bf16 %v5412_v23  ;;  %v5413_v13 = vunpack.i.l.bf16 %v5412_v23  ;;  %v2696_v26 = vpop.xlane.xlu0 %2695 }
 0xaa7   :  { %5584 = vrcp.f32 %v2696_v26 }
 0xaa8   :  { %v5256_v25 = vpack.c.bf16 %v5414_v24, %v5413_v13  ;;  %5586 = vrcp.f32 %v2699_v22 }
 0xaaa   :  { %5258 = vmatprep.subr.msk.bf16.mxu0 %vm5910_vm2, %v5256_v25  ;;  %v5407_v27 = vpop.permute.xlu0 %5406 }
 0xaab   :  { %5261 = vmatpush3.bf16.xpose.msk.msra.mxu0 %vm5910_vm2, %v5256_v25  ;;  %v5409_v33 = vunpack.i.h.bf16 %v5407_v27  ;;  %v5408_v34 = vunpack.i.l.bf16 %v5407_v27 }
 0xaad   :  { %v5224_v35 = vpack.c.bf16 %v5409_v33, %v5408_v34 }
 0xaaf   :  { %v4963_v28 = vpop.f32.mrb[30].mxu1 }
 0xab0   :  { %v2236_v30 = vpop.f32.mrb[31].mxu1 }
 0xab1   :  { %v5585_v15 = vpop.eup %5584 }
 0xab2   :  { %5053 = vmatmul.mubr.msk.f32.vlgmr.msra.gmra.mrb[36].mxu0 %vm886_vm1, %v5969_v12  ;;  %v5587_v46 = vpop.eup %5586  ;;  %v2702_v47 = vmul.f32 %v5585_v15, %v5583_v10 }
 0xab3   :  { %v4977_v16 = vpop.f32.mrb[32].mxu1  ;;  %5080 = vmatprep.mubr.msk.f32.mxu0 %vm886_vm1, %v6009_v60  ;;  %v2703_v48 = vmul.f32 %v5587_v46, %v5581_v9 }
 0xab4   :  { %v2428_v17 = vpop.f32.mrb[33].mxu1 }
 0xab5   :  { %4982 = vmatprep.mubr.msk.f32.mxu1 %vm886_vm1, %v2428_v17 }
 0xab6   :  { %4983 = vmatmul.mubr.msk.f32.vlgmr.msra.gmra.mrb[34].mxu1 %vm886_vm1, %v4977_v16 }
 0xab7   :  { %5217 = vmatpush3.bf16.msra.mxu1 %v6051_v6  ;;  %4989 = vmatprep.mubr.msk.f32.mxu1 %vm886_vm1, %v2236_v30 }
 0xab8   :  { %5225 = vmatprep.subr.bf16.mxu1 %v5224_v35  ;;  %v5019_v36 = vpop.f32.mrb[32].mxu0 }
 0xab9   :  { %v2954_v37 = vadd.f32 %v5019_v36, %v6094_v57  ;;  %v2948_v12 = vpop.f32.mrb[33].mxu0 }
 0xaba   :  { %v2949_v40 = vadd.f32 %v2948_v12, %v6094_v57 }
 0xabb   :  { %v2960_v60 = vsel %vm977_vm3, %v2954_v37, -inf }
 0xabc   :  { %2961 = vmax.xlane.f32.xlu0 %v2960_v60  ;;  %v2957_v45 = vsel %vm886_vm1, %v2949_v40, -inf }
 0xabd   :  { %2958 = vmax.xlane.f32.xlu1 %v2957_v45 }
 0xabe   :  { %4990 = vmatmul.mubr.msk.f32.vlgmr.msra.gmra.mrb[34].mxu1 %vm886_vm1, %v4963_v28 }
 0xabf   :  { %5227 = vmatpush3.bf16.msra.mxu1 %v5224_v35  ;;  %5003 = vmatprep.mubr.msk.f32.mxu1 %vm886_vm1, %v2702_v47 }
 0xac0   :  { %v5040_v49 = vpop.f32.mrb[34].mxu0  ;;  %5229 = vmatprep.subr.bf16.mxu1 %v6089_v44 }
 0xac1   :  { %v3254_v51 = vpop.f32.mrb[35].mxu0  ;;  %v3260_v7 = vadd.f32 %v5040_v49, %v6243_v63 }
 0xac2   :  { %5004 = vmatmul.mubr.msk.f32.vlgmr.msra.gmra.mrb[36].mxu1 %vm886_vm1, %v2703_v48  ;;  %v3255_v31 = vadd.f32 %v3254_v51, %v6243_v63 }
 0xac3   :  { %5231 = vmatpush3.bf16.msra.mxu1 %v6089_v44 }
 0xac4   :  { %v3263_v9 = vsel %vm886_vm1, %v3255_v31, -inf }
 0xb49   :  { %v2962_v57 = vpop.xlane.xlu0 %2961 }
 0xb4a   :  { %v2964_v52 = vsub.f32 %v2954_v37, %v2962_v57  ;;  %v2959_v53 = vpop.xlane.xlu1 %2958 }
 0xb4b   :  { %v2963_v50 = vsub.f32 %v2949_v40, %v2959_v53 }
 0xb4c   :  { %v2967_v54 = vmul.f32 1.442695, %v2964_v52 }
 0xb4d   :  { %v2965_v55 = vmul.f32 1.442695, %v2963_v50 }
 0xb4e   :  { %5588 = vpow2.f32 %v2967_v54  ;;  %v5764_v54 = vmov 0  }
 0xb4f   :  { %5590 = vpow2.f32 %v2965_v55  ;;  %5451 = vset.pattern.permute.xlu1 %v5764_v54  ;;  %5450 = vset.pattern.permute.xlu0 %v5764_v54 }
 0xb58   :  { %v5589_v56 = vpop.eup %5588 }
 0xb59   :  { %v5591_v58 = vpop.eup %5590  ;;  %v2972_v18 = vsel %vm977_vm3, %v5589_v56, 0.0 }
 0xb5a   :  { %2973 = vadd.xlane.f32.xlu1 %v2972_v18  ;;  %v2969_v59 = vsel %vm886_vm1, %v5591_v58, 0.0 }
 0xb5b   :  { %2970 = vadd.xlane.f32.xlu0 %v2969_v59 }
 0xb6b   :  { %5421 = vrot.lane.b32.xlu1 %v5936_v39, %s5759_s2 }
 0xb71   :  { %5416 = vrot.lane.b32.xlu0 %v5930_v32, %s5763_s16  ;;  %v3266_v32 = vsel %vm977_vm3, %v3260_v7, -inf }
 0xb85   :  { %v5054_v61 = vpop.f32.mrb[36].mxu0 }
 0xb86   :  { %v3446_v3 = vpop.f32.mrb[37].mxu0  ;;  %v3452_v8 = vadd.f32 %v5054_v61, %v6243_v63 }
 0xb87   :  { %v3447_v38 = vadd.f32 %v3446_v3, %v6243_v63 }
 0xb88   :  { %v3458_v41 = vsel %vm977_vm3, %v3452_v8, -inf }
 0xb89   :  { %v3455_v43 = vsel %vm886_vm1, %v3447_v38, -inf }
 0xb8f   :  { %3264 = vmax.xlane.f32.xlu1 %v3263_v9 }
 0xb90   :  { %3267 = vmax.xlane.f32.xlu0 %v3266_v32 }
 0xb93   :  { %3459 = vmax.xlane.f32.xlu1 %v3458_v41 }
 0xb94   :  { %3456 = vmax.xlane.f32.xlu0 %v3455_v43 }
 0xb95   :  { %v5005_v10 = vpop.f32.mrb[36].mxu1 }
 0xb96   :  { %v2782_v20 = vpop.f32.mrb[37].mxu1 }
 0xb97   :  { %5010 = vmatprep.mubr.msk.f32.mxu1 %vm886_vm1, %v2782_v20 }
 0xb98   :  { %5011 = vmatmul.mubr.msk.f32.vlgmr.msra.gmra.mrb[34].mxu1 %vm886_vm1, %v5005_v10 }
 0xbe7   :  { %v2974_v5 = vpop.xlane.xlu1 %2973 }
 0xbe8   :  { %5592 = vrcp.f32 %v2974_v5  ;;  %v2971_v19 = vpop.xlane.xlu0 %2970 }
 0xbe9   :  { %5594 = vrcp.f32 %v2971_v19 }
 0xbeb   :  { %v5422_v22 = vpop.permute.xlu1 %5421 }
 0xbec   :  { %v5424_v23 = vunpack.i.h.bf16 %v5422_v22  ;;  %v5423_v24 = vunpack.i.l.bf16 %v5422_v22  ;;  %v5417_v13 = vpop.permute.xlu0 %5416 }
 0xbed   :  { %v5419_v25 = vunpack.i.h.bf16 %v5417_v13  ;;  %v5418_v26 = vunpack.i.l.bf16 %v5417_v13 }
 0xbee   :  { %v5274_v27 = vpack.c.bf16 %v5424_v23, %v5423_v24 }
 0xbef   :  { %v5238_v28 = vpack.c.bf16 %v5419_v25, %v5418_v26 }
 0xbf0   :  { %5276 = vmatprep.subr.msk.bf16.mxu0 %vm5910_vm2, %v5274_v27 }
 0xbf1   :  { %5239 = vmatprep.subr.bf16.mxu1 %v5238_v28  ;;  %5279 = vmatpush3.bf16.xpose.msk.msra.mxu0 %vm5910_vm2, %v5274_v27 }
 0xbf2   :  { %v5593_v30 = vpop.eup %5592  ;;  %5241 = vmatpush3.bf16.msra.mxu1 %v5238_v28 }
 0xbf3   :  { %v5595_v33 = vpop.eup %5594  ;;  %5243 = vmatprep.subr.bf16.mxu1 %v6143_v4  ;;  %v2978_v16 = vmul.f32 %v5593_v30, %v5589_v56 }
 0xbf4   :  { %v2977_v34 = vmul.f32 %v5595_v33, %v5591_v58 }
 0xbf6   :  { %5024 = vmatprep.mubr.msk.f32.mxu1 %vm886_vm1, %v2977_v34 }
 0xbf7   :  { %5025 = vmatmul.mubr.msk.f32.vlgmr.msra.gmra.mrb[38].mxu1 %vm886_vm1, %v2978_v16  ;;  %v6305_v16 = vld [vmem:[%s6430_s4 + $0x8] sm:$0x7] }
 0xbf8   :  { %5081 = vmatmul.mubr.msk.f32.vlgmr.msra.gmra.mrb[38].mxu0 %vm886_vm1, %v6017_v0  ;;  %5245 = vmatpush3.bf16.msra.mxu1 %v6143_v4 }
 0xbf9   :  { %5101 = vmatprep.mubr.msk.f32.mxu0 %vm886_vm1, %v6021_v1 }
 0xc1c   :  { %v3265_v17 = vpop.xlane.xlu1 %3264 }
 0xc1d   :  { %v3269_v35 = vsub.f32 %v3255_v31, %v3265_v17  ;;  %v3268_v36 = vpop.xlane.xlu0 %3267  ;;  %v6325_v17 = vld [vmem:[%s6429_s3 + $0x8] sm:$0x7] }
 0xc1e   :  { %v3270_v37 = vsub.f32 %v3260_v7, %v3268_v36 }
 0xc1f   :  { %v3271_v12 = vmul.f32 1.442695, %v3269_v35 }
 0xc20   :  { %v3273_v15 = vmul.f32 1.442695, %v3270_v37  ;;  %v3460_v40 = vpop.xlane.xlu1 %3459 }
 0xc21   :  { %5596 = vpow2.f32 %v3271_v12  ;;  %v3462_v60 = vsub.f32 %v3452_v8, %v3460_v40  ;;  %v3457_v45 = vpop.xlane.xlu0 %3456 }
 0xc22   :  { %5598 = vpow2.f32 %v3273_v15  ;;  %v3461_v46 = vsub.f32 %v3447_v38, %v3457_v45 }
 0xc23   :  { %v3465_v47 = vmul.f32 1.442695, %v3462_v60 }
 0xc24   :  { %v3463_v48 = vmul.f32 1.442695, %v3461_v46 }
 0xc25   :  { %5600 = vpow2.f32 %v3465_v47 }
 0xc26   :  { %5602 = vpow2.f32 %v3463_v48 }
 0xc2b   :  { %v5597_v0 = vpop.eup %5596 }
 0xc2c   :  { %v5599_v49 = vpop.eup %5598  ;;  %v3275_v1 = vsel %vm886_vm1, %v5597_v0, 0.0 }
 0xc2d   :  { %3276 = vadd.xlane.f32.xlu0 %v3275_v1  ;;  %v3278_v51 = vsel %vm977_vm3, %v5599_v49, 0.0 }
 0xc2e   :  { %3279 = vadd.xlane.f32.xlu1 %v3278_v51 }
 0xc2f   :  { %v5601_v57 = vpop.eup %5600 }
 0xc30   :  { %v5603_v52 = vpop.eup %5602  ;;  %v3470_v53 = vsel %vm977_vm3, %v5601_v57, 0.0 }
 0xc31   :  { %v3467_v50 = vsel %vm886_vm1, %v5603_v52, 0.0 }
 0xc32   :  { %3468 = vadd.xlane.f32.xlu0 %v3467_v50  ;;  %3471 = vadd.xlane.f32.xlu1 %v3470_v53 }
 0xc43   :  { %5431 = vrot.lane.b32.xlu1 %v5936_v39, %s5761_s24 }
 0xc47   :  { %5436 = vrot.lane.b32.xlu1 %v5936_v39, %s5760_s23 }
 0xc48   :  { %5426 = vrot.lane.b32.xlu0 %v5936_v39, %s5756_s5 }
 0xcba   :  { %v3277_v55 = vpop.xlane.xlu0 %3276 }
 0xcbb   :  { %v3280_v56 = vpop.xlane.xlu1 %3279  ;;  %5604 = vrcp.f32 %v3277_v55 }
 0xcbc   :  { %5606 = vrcp.f32 %v3280_v56 }
 0xcbf   :  { %v3469_v58 = vpop.xlane.xlu0 %3468  ;;  %v3472_v18 = vpop.xlane.xlu1 %3471 }
 0xcc0   :  { %5608 = vrcp.f32 %v3469_v58 }
 0xcc1   :  { %5610 = vrcp.f32 %v3472_v18 }
 0xcc3   :  { %v5427_v59 = vpop.permute.xlu0 %5426  ;;  %v5432_v62 = vpop.permute.xlu1 %5431 }
 0xcc4   :  { %v5429_v61 = vunpack.i.h.bf16 %v5427_v59  ;;  %v5428_v3 = vunpack.i.l.bf16 %v5427_v59  ;;  %v5434_v32 = vunpack.i.h.bf16 %v5432_v62  ;;  %v5433_v41 = vunpack.i.l.bf16 %v5432_v62 }
 0xcc5   :  { %v5605_v38 = vpop.eup %5604 }
 0xcc6   :  { %v5252_v31 = vpack.c.bf16 %v5429_v61, %v5428_v3  ;;  %v5607_v19 = vpop.eup %5606  ;;  %v3283_v24 = vmul.f32 %v5605_v38, %v5597_v0  ;;  %v5262_v25 = vpack.c.bf16 %v5434_v32, %v5433_v41 }
 0xcc7   :  { %v5437_v7 = vpop.permute.xlu1 %5436  ;;  %v3284_v28 = vmul.f32 %v5607_v19, %v5599_v49 }
 0xcc8   :  { %v5439_v8 = vunpack.i.h.bf16 %v5437_v7  ;;  %v5438_v9 = vunpack.i.l.bf16 %v5437_v7  ;;  %5253 = vmatprep.subr.bf16.mxu1 %v5252_v31 }
 0xcca   :  { %v5288_v43 = vpack.c.bf16 %v5439_v8, %v5438_v9  ;;  %v5026_v10 = vpop.f32.mrb[38].mxu1  ;;  %v5609_v13 = vpop.eup %5608 }
 0xccb   :  { %v3057_v20 = vpop.f32.mrb[39].mxu1  ;;  %v5082_v5 = vpop.f32.mrb[38].mxu0  ;;  %v3475_v34 = vmul.f32 %v5609_v13, %v5603_v52 }
 0xccc   :  { %v3806_v22 = vadd.f32 %v5082_v5, %v6243_v63  ;;  %5031 = vmatprep.mubr.msk.f32.mxu1 %vm886_vm1, %v3057_v20  ;;  %v3800_v23 = vpop.f32.mrb[39].mxu0  ;;  %5290 = vmatprep.subr.msk.bf16.mxu0 %vm5910_vm2, %v5288_v43  ;;  %v5611_v33 = vpop.eup %5610 }
 0xccd   :  { %v3801_v26 = vadd.f32 %v3800_v23, %v6243_v63  ;;  %5032 = vmatmul.mubr.msk.f32.vlgmr.msra.gmra.mrb[34].mxu1 %vm886_vm1, %v5026_v10  ;;  %5293 = vmatpush3.bf16.xpose.msk.msra.mxu0 %vm5910_vm2, %v5288_v43  ;;  %v3476_v14 = vmul.f32 %v5611_v33, %v5601_v57 }
 0xcce   :  { %5255 = vmatpush3.bf16.msra.mxu1 %v5252_v31  ;;  %5045 = vmatprep.mubr.msk.f32.mxu1 %vm886_vm1, %v3283_v24  ;;  %v3812_v27 = vsel %vm977_vm3, %v3806_v22, -inf }
 0xccf   :  { %5263 = vmatprep.subr.bf16.mxu1 %v5262_v25  ;;  %3813 = vmax.xlane.f32.xlu0 %v3812_v27  ;;  %v3809_v30 = vsel %vm886_vm1, %v3801_v26, -inf }
 0xcd0   :  { %3810 = vmax.xlane.f32.xlu1 %v3809_v30 }
 0xcd1   :  { %5046 = vmatmul.mubr.msk.f32.vlgmr.msra.gmra.mrb[40].mxu1 %vm886_vm1, %v3284_v28 }
 0xcd2   :  { %5265 = vmatpush3.bf16.msra.mxu1 %v5262_v25  ;;  %5059 = vmatprep.mubr.msk.f32.mxu1 %vm886_vm1, %v3475_v34 }
 0xcd3   :  { %5267 = vmatprep.subr.bf16.mxu1 %v6003_v42 }
 0xcd4   :  { %5102 = vmatmul.mubr.msk.f32.vlgmr.msra.gmra.mrb[40].mxu0 %vm886_vm1, %v6032_v2  ;;  %v6311_v2 = vld [vmem:[%s6430_s4] sm:$0xff] }
 0xcd5   :  { %5060 = vmatmul.mubr.msk.f32.vlgmr.msra.gmra.mrb[42].mxu1 %vm886_vm1, %v3476_v14 }
 0xcd6   :  { %5269 = vmatpush3.bf16.msra.mxu1 %v6003_v42  ;;  %v5765_v42 = vmov 1  }
 0xcd7   :  { %5271 = vmatprep.subr.bf16.mxu1 %v6051_v6 }
 0xce1   :  { %5441 = vrot.lane.b32.xlu1 %v5936_v39, %s5762_s14 }
 0xce5   :  { %5446 = vrot.lane.b32.xlu1 %v5936_v39, %s5763_s16  ;;  %v6318_v39 = vld [vmem:[%s6429_s3] sm:$0xff] }
 0xce9   :  { %2044 = vperm.xlu1 %5451, %v6305_v16  }
 0xced   :  { %5452 = vset.pattern.permute.xlu1 %v5765_v42 }
 0xcee   :  { %3167 = vperm.xlu1 %5452, %v6311_v2  }
 0xcf2   :  { %3171 = vperm.xlu1 %5452, %v6305_v16  }
 0xcf6   :  { %5453 = vset.pattern.permute.xlu1 %v5764_v54 }
 0xcf7   :  { %2025 = vperm.xlu1 %5453, %v6318_v39  }
 0xcfb   :  { %2030 = vperm.xlu1 %5453, %v6325_v17  }
 0xcff   :  { %5454 = vset.pattern.permute.xlu1 %v5765_v42 }
 0xd00   :  { %3155 = vperm.xlu1 %5454, %v6318_v39  }
 0xd04   :  { %3159 = vperm.xlu1 %5454, %v6325_v17  }
 0xd5c   :  { %v3814_v35 = vpop.xlane.xlu0 %3813 }
 0xd5d   :  { %v3816_v36 = vsub.f32 %v3806_v22, %v3814_v35  ;;  %v3811_v37 = vpop.xlane.xlu1 %3810  ;;  %v5766_v35 = vmov 2  }
 0xd5e   :  { %v3815_v12 = vsub.f32 %v3801_v26, %v3811_v37  ;;  %5455 = vset.pattern.permute.xlu1 %v5766_v35 }
 0xd5f   :  { %v3819_v15 = vmul.f32 1.442695, %v3816_v36  ;;  %4294 = vperm.xlu1 %5455, %v6311_v2  }
 0xd60   :  { %v3817_v40 = vmul.f32 1.442695, %v3815_v12  ;;  %v6376_v12 = vld [vmem:[#allocation2] sm:$0xff] }
 0xd61   :  { %v5442_v51 = vpop.permute.xlu1 %5441 }
 0xd62   :  { %5612 = vpow2.f32 %v3817_v40  ;;  %v5444_v53 = vunpack.i.h.bf16 %v5442_v51  ;;  %v5443_v50 = vunpack.i.l.bf16 %v5442_v51 }
 0xd63   :  { %5614 = vpow2.f32 %v3819_v15  ;;  %4298 = vperm.xlu1 %5455, %v6305_v16   ;;  %v6380_v15 = vld [vmem:[#allocation2 + $0x8] sm:$0x7] }
 0xd64   :  { %v5280_v59 = vpack.c.bf16 %v5444_v53, %v5443_v50  ;;  %v4306_v16 = vmul.f32 %v6380_v15, %v6380_v15 }
 0xd65   :  { %v5447_v8 = vpop.permute.xlu1 %5446 }
 0xd66   :  { %v5448_v38 = vunpack.i.l.bf16 %v5447_v8 }
 0xd67   :  { %4282 = vperm.xlu1 %5455, %v6318_v39   ;;  %v4310_v39 = vsel %vm2021_vm4, %v4306_v16, 0.0 }
 0xd6b   :  { %4286 = vperm.xlu1 %5455, %v6325_v17   ;;  %v2045_v17 = vpop.permute.xlu1 %2044 }
 0xd6c   :  { %v5613_v60 = vpop.eup %5612 }
 0xd6d   :  { %v3821_v45 = vsel %vm886_vm1, %v5613_v60, 0.0  ;;  %v5615_v46 = vpop.eup %5614 }
 0xd6e   :  { %3822 = vadd.xlane.f32.xlu0 %v3821_v45  ;;  %v3824_v47 = vsel %vm977_vm3, %v5615_v46, 0.0 }
 0xd6f   :  { %v3168_v40 = vpop.permute.xlu1 %3167 }
 0xd72   :  { %3825 = vadd.xlane.f32.xlu0 %v3824_v47 }
 0xd8f   :  { %4311 = vadd.xlane.f32.xlu1 %v4310_v39 }
 0xda0   :  { %v5033_v48 = vpop.f32.mrb[34].mxu1 }
 0xda1   :  { %v6333_v0 = vadd.f32 %v5033_v48, %v6196_v29  ;;  %v3138_v49 = vpop.f32.mrb[35].mxu1 }
 0xda2   :  { %v6336_v1 = vadd.f32 %v6196_v29, %v3138_v49 }
 0xda3   :  { %4556 = vst.msk [vmem:[%s6437_s11 + $0x18] sm:$0x7] %vm2021_vm4, %v6333_v0 }
 0xda4   :  { %4555 = vst.msk [vmem:[%s6437_s11 + $0x10] sm:$0xff] %vm114_vm0, %v6336_v1  ;;  %v5047_v57 = vpop.f32.mrb[40].mxu1 }
 0xda5   :  { %v3363_v52 = vpop.f32.mrb[41].mxu1 }
 0xda7   :  { %v5103_v54 = vpop.f32.mrb[40].mxu0 }
 0xda8   :  { %v5061_v55 = vpop.f32.mrb[42].mxu1  ;;  %v4075_v56 = vpop.f32.mrb[41].mxu0  ;;  %v4081_v62 = vadd.f32 %v5103_v54, %v6243_v63 }
 0xda9   :  { %v4076_v58 = vadd.f32 %v4075_v56, %v6243_v63  ;;  %v3555_v18 = vpop.f32.mrb[43].mxu1 }
 0xdaa   :  { %5066 = vmatprep.mubr.msk.f32.mxu1 %vm886_vm1, %v3555_v18  ;;  %v4087_v3 = vsel %vm977_vm3, %v4081_v62, -inf }
 0xdab   :  { %5067 = vmatmul.mubr.msk.f32.vlgmr.msra.gmra.mrb[44].mxu1 %vm886_vm1, %v5061_v55  ;;  %v4084_v61 = vsel %vm886_vm1, %v4076_v58, -inf }
 0xdac   :  { %5273 = vmatpush3.bf16.msra.mxu1 %v6051_v6  ;;  %4085 = vmax.xlane.f32.xlu0 %v4084_v61  ;;  %v5449_v6 = vunpack.i.h.bf16 %v5447_v8 }
 0xdad   :  { %5073 = vmatprep.mubr.msk.f32.mxu1 %vm886_vm1, %v3363_v52  ;;  %5281 = vmatprep.subr.bf16.mxu1 %v5280_v59 }
 0xdae   :  { %v5294_v43 = vpack.c.bf16 %v5449_v6, %v5448_v38 }
 0xdb0   :  { %4088 = vmax.xlane.f32.xlu0 %v4087_v3  ;;  %v3174_v3 = vmul.f32 %v3168_v40, %v6336_v1 }
 0xdb3   :  { %5074 = vmatmul.mubr.msk.f32.vlgmr.msra.gmra.mrb[44].mxu1 %vm886_vm1, %v5047_v57 }
 0xdb4   :  { %5283 = vmatpush3.bf16.msra.mxu1 %v5280_v59 }
 0xdb5   :  { %5285 = vmatprep.subr.bf16.mxu1 %v6089_v44 }
 0xdfb   :  { %v3823_v31 = vpop.xlane.xlu0 %3822 }
 0xdfc   :  { %5616 = vrcp.f32 %v3823_v31 }
 0xdff   :  { %v3826_v63 = vpop.xlane.xlu0 %3825 }
 0xe00   :  { %5618 = vrcp.f32 %v3826_v63 }
 0xe06   :  { %v5617_v7 = vpop.eup %5616 }
 0xe07   :  { %v3829_v9 = vmul.f32 %v5617_v7, %v5613_v60  ;;  %v3172_v60 = vpop.permute.xlu1 %3171 }
 0xe08   :  { %v3175_v53 = vmul.f32 %v3172_v60, %v6333_v0 }
 0xe09   :  { %5087 = vmatprep.mubr.msk.f32.mxu1 %vm886_vm1, %v3829_v9 }
 0xe0a   :  { %v5619_v32 = vpop.eup %5618 }
 0xe0b   :  { %v3830_v41 = vmul.f32 %v5619_v32, %v5615_v46  ;;  %v2026_v45 = vpop.permute.xlu1 %2025 }
 0xe0c   :  { %v2033_v61 = vmul.f32 %v2026_v45, %v6202_v21 }
 0xe0d   :  { %5088 = vmatmul.mubr.msk.f32.vlgmr.msra.gmra.mrb[46].mxu1 %vm886_vm1, %v3830_v41 }
 0xe0e   :  { %5287 = vmatpush3.bf16.msra.mxu1 %v6089_v44 }
 0xe0f   :  { %5295 = vmatprep.subr.bf16.mxu1 %v5294_v43  ;;  %v2031_v46 = vpop.permute.xlu1 %2030 }
 0xe10   :  { %v2034_v18 = vmul.f32 %v2031_v46, %v6199_v11 }
 0xe13   :  { %v3156_v47 = vpop.permute.xlu1 %3155 }
 0xe14   :  { %v3162_v54 = vmul.f32 %v3156_v47, %v6336_v1 }
 0xe16   :  { %v3164_v6 = vadd.f32 %v3162_v54, %v2033_v61 }
 0xe17   :  { %v3160_v48 = vpop.permute.xlu1 %3159 }
 0xe18   :  { %v3163_v50 = vmul.f32 %v3160_v48, %v6333_v0 }
 0xe1a   :  { %v3165_v0 = vadd.f32 %v3163_v50, %v2034_v18 }
 0xe1b   :  { %v4295_v49 = vpop.permute.xlu1 %4294 }
 0xe1f   :  { %v4299_v51 = vpop.permute.xlu1 %4298 }
 0xe23   :  { %v4283_v57 = vpop.permute.xlu1 %4282 }
 0xe27   :  { %v4287_v63 = vpop.permute.xlu1 %4286 }
 0xe39   :  { %v4086_v10 = vpop.xlane.xlu0 %4085 }
 0xe3a   :  { %v4090_v20 = vsub.f32 %v4076_v58, %v4086_v10  ;;  %v2048_v58 = vmul.f32 %v2045_v17, %v6199_v11 }
 0xe3c   :  { %v4092_v5 = vmul.f32 1.442695, %v4090_v20  ;;  %v3177_v9 = vadd.f32 %v3175_v53, %v2048_v58 }
 0xe3d   :  { %v4089_v19 = vpop.xlane.xlu0 %4088 }
 0xe3e   :  { %5620 = vpow2.f32 %v4092_v5  ;;  %v4091_v22 = vsub.f32 %v4081_v62, %v4089_v19 }
 0xe40   :  { %v4094_v23 = vmul.f32 1.442695, %v4091_v22 }
 0xe42   :  { %5622 = vpow2.f32 %v4094_v23 }
 0xe48   :  { %v5621_v24 = vpop.eup %5620 }
 0xe49   :  { %v4096_v13 = vsel %vm886_vm1, %v5621_v24, 0.0 }
 0xe4a   :  { %4097 = vadd.xlane.f32.xlu0 %v4096_v13 }
 0xe4c   :  { %v5623_v25 = vpop.eup %5622 }
 0xe4d   :  { %v4099_v26 = vsel %vm977_vm3, %v5623_v25, 0.0 }
 0xe4e   :  { %4100 = vadd.xlane.f32.xlu0 %v4099_v26 }
 0xe64   :  { %2039 = vperm.xlu0 %5450, %v6311_v2  }
 0xe68   :  { %5456 = vset.pattern.permute.xlu0 %v5766_v35 }
 0xed7   :  { %v4098_v44 = vpop.xlane.xlu0 %4097 }
 0xed8   :  { %5624 = vrcp.f32 %v4098_v44 }
 0xedb   :  { %v4101_v27 = vpop.xlane.xlu0 %4100 }
 0xedc   :  { %5626 = vrcp.f32 %v4101_v27 }
 0xee0   :  { %v5089_v28 = vpop.f32.mrb[46].mxu1 }
 0xee1   :  { %v3909_v30 = vpop.f32.mrb[47].mxu1 }
 0xee2   :  { %v5625_v33 = vpop.eup %5624  ;;  %5094 = vmatprep.mubr.msk.f32.mxu1 %vm886_vm1, %v3909_v30 }
 0xee3   :  { %5095 = vmatmul.mubr.msk.f32.vlgmr.msra.gmra.mrb[44].mxu1 %vm886_vm1, %v5089_v28  ;;  %v4104_v34 = vmul.f32 %v5625_v33, %v5621_v24  ;;  %v2040_v52 = vpop.permute.xlu0 %2039 }
 0xee4   :  { %5297 = vmatpush3.bf16.msra.mxu1 %v5294_v43  ;;  %v2047_v55 = vmul.f32 %v2040_v52, %v6202_v21 }
 0xee5   :  { %5108 = vmatprep.mubr.msk.f32.mxu1 %vm886_vm1, %v4104_v34  ;;  %5299 = vmatprep.subr.bf16.mxu1 %v6143_v4 }
 0xee6   :  { %v5627_v14 = vpop.eup %5626  ;;  %v3176_v11 = vadd.f32 %v3174_v3, %v2047_v55 }
 0xee7   :  { %v4105_v42 = vmul.f32 %v5627_v14, %v5623_v25  ;;  %v4312_v25 = vpop.xlane.xlu1 %4311 }
 0xee8   :  { %v4314_v26 = vmax.f32 %v4312_v25, 1e-24 }
 0xee9   :  { %5109 = vmatmul.mubr.msk.f32.vlgmr.msra.gmra.mrb[48].mxu1 %vm886_vm1, %v4105_v42 }
 0xeea   :  { %5301 = vmatpush3.bf16.msra.mxu1 %v6143_v4  ;;  %v4305_v4 = vmul.f32 %v6376_v12, %v6376_v12  ;;  %5628 = vrsqrt.f32 %v4314_v26 }
 0xeec   :  { %v4307_v2 = vsel %vm114_vm0, %v4305_v4, 0.0 }
 0xeed   :  { %4308 = vadd.xlane.f32.xlu0 %v4307_v2 }
 0xef4   :  { %v5629_v35 = vpop.eup %5628 }
 0xf7a   :  { %v4309_v13 = vpop.xlane.xlu0 %4308 }
 0xf7b   :  { %v4313_v44 = vmax.f32 %v4309_v13, 1e-24 }
 0xfbc   :  { %v5110_v36 = vpop.f32.mrb[48].mxu1 }
 0xfbd   :  { %v4184_v37 = vpop.f32.mrb[49].mxu1 }
 0xfbe   :  { %5115 = vmatprep.mubr.msk.f32.mxu1 %vm886_vm1, %v4184_v37  ;;  %v4318_v37 = vmul.f32 %v6380_v15, %v5629_v35 }
 0xfbf   :  { %5116 = vmatmul.mubr.msk.f32.vlgmr.msra.gmra.mrb[44].mxu1 %vm886_vm1, %v5110_v36 }
0x1092   :  { %v5117_v56 = vpop.f32.mrb[44].mxu1 }
0x1093   :  { %v4277_v59 = vadd.f32 %v5117_v56, %v6196_v29  ;;  %v4265_v62 = vpop.f32.mrb[45].mxu1 }
0x1094   :  { %v4276_v31 = vadd.f32 %v6196_v29, %v4265_v62 }
0x1095   :  { %4590 = vst.msk [vmem:[%s6437_s11 + $0x28] sm:$0x7] %vm2021_vm4, %v4277_v59  ;;  %v4302_v7 = vmul.f32 %v4299_v51, %v4277_v59  ;;  %v4290_v8 = vmul.f32 %v4287_v63, %v4277_v59 }
0x1096   :  { %4589 = vst.msk [vmem:[%s6437_s11 + $0x20] sm:$0xff] %vm114_vm0, %v4276_v31  ;;  %v4289_v21 = vmul.f32 %v4283_v57, %v4276_v31  ;;  %v4301_v1 = vmul.f32 %v4295_v49, %v4276_v31 }
0x1097   :  { %v4292_v29 = vadd.f32 %v4290_v8, %v3165_v0  ;;  %v4304_v38 = vadd.f32 %v4302_v7, %v3177_v9 }
0x1098   :  { %v4291_v32 = vadd.f32 %v4289_v21, %v3164_v6  ;;  %v4303_v41 = vadd.f32 %v4301_v1, %v3176_v11 }
0x1099   :  { %v4342_v43 = vmul.f32 %v4304_v38, %v4304_v38  ;;  %v4320_v23 = vmul.f32 %v4292_v29, %v4292_v29 }
0x109a   :  { %v4319_v10 = vmul.f32 %v4291_v32, %v4291_v32  ;;  %v4341_v5 = vmul.f32 %v4303_v41, %v4303_v41 }
0x109b   :  { %v4346_v20 = vsel %vm2021_vm4, %v4342_v43, 0.0  ;;  %v4324_v24 = vsel %vm2021_vm4, %v4320_v23, 0.0 }
0x109c   :  { %4347 = vadd.xlane.f32.xlu0 %v4346_v20  ;;  %v4321_v19 = vsel %vm114_vm0, %v4319_v10, 0.0  ;;  %v4343_v22 = vsel %vm114_vm0, %v4341_v5, 0.0 }
0x109d   :  { %4322 = vadd.xlane.f32.xlu1 %v4321_v19 }
0x10a0   :  { %4344 = vadd.xlane.f32.xlu0 %v4343_v22 }
0x10a4   :  { %4325 = vadd.xlane.f32.xlu0 %v4324_v24 }
0x1129   :  { %v4348_v27 = vpop.xlane.xlu0 %4347 }
0x112a   :  { %v4350_v28 = vmax.f32 %v4348_v27, 1e-24  ;;  %v4323_v30 = vpop.xlane.xlu1 %4322 }
0x112b   :  { %v4327_v33 = vmax.f32 %v4323_v30, 1e-24 }
0x112c   :  { %5630 = vrsqrt.f32 %v4350_v28 }
0x112d   :  { %5632 = vrsqrt.f32 %v4313_v44  ;;  %v4345_v34 = vpop.xlane.xlu0 %4344 }
0x112e   :  { %5634 = vrsqrt.f32 %v4327_v33  ;;  %v4349_v14 = vmax.f32 %v4345_v34, 1e-24 }
0x1130   :  { %5636 = vrsqrt.f32 %v4349_v14 }
0x1131   :  { %v4326_v42 = vpop.xlane.xlu0 %4325 }
0x1132   :  { %v4328_v36 = vmax.f32 %v4326_v42, 1e-24 }
0x1134   :  { %5638 = vrsqrt.f32 %v4328_v36 }
0x1136   :  { %v5631_v4 = vpop.eup %5630 }
0x1137   :  { %v5633_v16 = vpop.eup %5632  ;;  %v4354_v2 = vmul.f32 %v5631_v4, %v4304_v38 }
0x1138   :  { %v5635_v39 = vpop.eup %5634  ;;  %v4317_v45 = vmul.f32 %v6376_v12, %v5633_v16 }
0x1139   :  { %v4356_v17 = vmul.f32 %v4354_v2, %v4318_v37  ;;  %v4331_v47 = vmul.f32 %v5635_v39, %v4291_v32 }
0x113a   :  { %v5637_v40 = vpop.eup %5636 }
0x113b   :  { %v4360_v60 = vsel %vm2021_vm4, %v4356_v17, 0.0  ;;  %v4353_v46 = vmul.f32 %v5637_v40, %v4303_v41  ;;  %v4333_v52 = vmul.f32 %v4331_v47, %v4317_v45 }
0x113c   :  { %4361 = vadd.xlane.f32.xlu0 %v4360_v60 }
0x113d   :  { %v4355_v48 = vmul.f32 %v4353_v46, %v4317_v45  ;;  %v4335_v50 = vsel %vm114_vm0, %v4333_v52, 0.0 }
0x113e   :  { %v5639_v49 = vpop.eup %5638 }
0x113f   :  { %v4357_v51 = vsel %vm114_vm0, %v4355_v48, 0.0  ;;  %v4332_v57 = vmul.f32 %v5639_v49, %v4292_v29 }
0x1140   :  { %4358 = vadd.xlane.f32.xlu1 %v4357_v51 }
0x1141   :  { %v4334_v15 = vmul.f32 %v4332_v57, %v4318_v37 }
0x1143   :  { %v4338_v53 = vsel %vm2021_vm4, %v4334_v15, 0.0 }
0x1144   :  { %4339 = vadd.xlane.f32.xlu0 %v4338_v53  ;;  %4336 = vadd.xlane.f32.xlu1 %v4335_v50 }
0x11c9   :  { %v4362_v54 = vpop.xlane.xlu0 %4361 }
0x11ca   :  { %v4366_v55 = vsel %vm4365_vm5, %v4362_v54, 0.0 }
0x11cd   :  { %v4359_v12 = vpop.xlane.xlu1 %4358 }
0x11ce   :  { %v4364_v56 = vsel %vm4363_vm6, %v4359_v12, 0.0 }
0x11cf   :  { %v4367_v58 = vadd.f32 %v4366_v55, %v4364_v56 }
0x11d1   :  { %v4340_v18 = vpop.xlane.xlu0 %4339  ;;  %4368 = vadd.xlane.f32.xlu1 %v4367_v58  ;;  %v4337_v59 = vpop.xlane.xlu1 %4336 }
0x11d2   :  { %v4382_v62 = vsel %vm4365_vm5, %v4340_v18, 0.0  ;;  %v4381_v61 = vsel %vm4363_vm6, %v4337_v59, 0.0 }
0x11d3   :  { %v4383_v3 = vadd.f32 %v4382_v62, %v4381_v61 }
0x11d5   :  { %4384 = vadd.xlane.f32.xlu0 %v4383_v3 }
0x125e   :  { %v4369_v31 = vpop.xlane.xlu1 %4368 }
0x125f   :  { %v4370_v63 = vrot.slane %v4369_v31, 4 }
0x1261   :  { %v4371_v0 = vadd.f32 %v4370_v63, %v4369_v31 }
0x1262   :  { %v4385_v7 = vpop.xlane.xlu0 %4384 }
0x1263   :  { %v4372_v8 = vrot.slane %v4371_v0, 2  ;;  %v4386_v9 = vrot.slane %v4385_v7, 4 }
0x1265   :  { %v4387_v11 = vadd.f32 %v4386_v9, %v4385_v7  ;;  %v4373_v21 = vadd.f32 %v4372_v8, %v4371_v0 }
0x1267   :  { %v4388_v1 = vrot.slane %v4387_v11, 2  ;;  %v4374_v6 = vrot.slane %v4373_v21, 1 }
0x1269   :  { %v4389_v29 = vadd.f32 %v4388_v1, %v4387_v11  ;;  %v4375_v38 = vadd.f32 %v4374_v6, %v4373_v21 }
0x126b   :  { %5320 = vpush %v4375_v38  ;;  %v4390_v32 = vrot.slane %v4389_v29, 1 }
0x126d   :  { %v4391_v41 = vadd.f32 %v4390_v32, %v4389_v29 }
0x126f   :  { %5322 = vpush %v4391_v41 }
0x129c   :  { %s5321_s11 = spop %5320 }
0x129d   :  { %s4379_s1 = smul.f32 0.09090909, %s5321_s11 }
0x129f   :  { %s4380_s13 = sadd.f32 0.5, %s4379_s1 }
0x12a0   :  { %s5323_s22 = spop %5322 }
0x12a1   :  { %s4395_s7 = smul.f32 0.09090909, %s5323_s22 }
0x12a3   :  { %s4396_s15 = ssub.f32 %s4380_s13, %s4395_s7 }
0x12a5   :  { %s4397_s19 = smax.f32 %s5767_s6, %s4396_s15 }
0x12a6   :  { %4399 = sst [smem:[#allocation10]] %s4397_s19 }
0x12a7   :  { %5739 = shalt.err (!%p5736_p6)
}
0x12a8   :  { %s5768_s2 = smov [#allocation10]  }
0x12a9   :  { %4409 = dma.smem_to_hbm %s5768_s2, 16, %s6438_s12, [#allocation4]  }
0x12aa   :  { %5746 = dma.done.wait [#allocation4], 16  }
0x12ab   :  { %5747 = vsyncadd [#allocation4], 4294967280 }
0x12ac   :  { %4415 = sfence }
0x12ad   :  { %4416 = vsyncpa [#allocation3], 1 }
0x12ae   :  { %4417 = vsyncpa [#allocation6], 1 }
0x12af   :  { %4418 = vsyncpa [#allocation9], 1 }
0x12b0   :  { %4419 = vsyncpa [#allocation4], 1 }

</bundles_post_ra>
